<compile_context>
chip_gen: v6e
topology: v6e:2x2x1
jax: 0.10.0
libtpu: 0.0.40
codegen_flags: <defaults>
</compile_context>

<pallas_src>
import numpy as np
import jax
import jax.numpy as jnp
from jax.experimental import pallas as pl
from jax.experimental.pallas import tpu as pltpu


def _make_flip_kernel(H):
    def kernel(flag_ref, x_ref, o_ref):
        # x_ref / o_ref: (T_N, H, W) VMEM blocks; flag_ref: (1,) int32 in SMEM.
        @pl.when(flag_ref[0] != 0)
        def _flip():
            # Reverse the sublane (H) axis with statically unrolled row copies.
            for h in range(H):
                o_ref[:, h:h + 1, :] = x_ref[:, H - 1 - h:H - h, :]

        @pl.when(flag_ref[0] == 0)
        def _copy():
            o_ref[...] = x_ref[...]

    return kernel


def _pick_tile(n_items, per_item_bytes, target_bytes=2 << 20):
    """Largest divisor of n_items with block <= ~target_bytes and >=2 grid steps."""
    t = max(1, min(n_items, target_bytes // max(per_item_bytes, 1)))
    if n_items >= 2:
        t = min(t, max(1, n_items // 2))   # at least 2 grid steps (v7x megacore)
    while n_items % t:
        t -= 1
    return t


def flip_last2_rows(x, flip_flag):
    """Pallas TPU kernel: flip x along axis -2 iff flip_flag != 0, else copy."""
    assert x.ndim >= 2, "need at least 2 dims to flip dim -2"
    orig_shape = x.shape
    H, W = orig_shape[-2], orig_shape[-1]
    N = int(np.prod(orig_shape[:-2])) if x.ndim > 2 else 1
    x2 = x.reshape(N, H, W)                        # free reshape, no transpose/pad

    per_block_item_bytes = H * W * x.dtype.itemsize
    t_n = _pick_tile(N, per_block_item_bytes)

    kernel = _make_flip_kernel(H)
    flag_arr = jnp.asarray([int(flip_flag)], dtype=jnp.int32)

    out = pl.pallas_call(
        kernel,
        out_shape=jax.ShapeDtypeStruct((N, H, W), x.dtype),
        grid_spec=pltpu.PrefetchScalarGridSpec(
            num_scalar_prefetch=1,
            grid=(N // t_n,),
            in_specs=[pl.BlockSpec((t_n, H, W), lambda i, flag: (i, 0, 0))],
            out_specs=pl.BlockSpec((t_n, H, W), lambda i, flag: (i, 0, 0)),
        ),
        compiler_params=pltpu.CompilerParams(
            dimension_semantics=("parallel",),
            vmem_limit_bytes=32 * 1024 * 1024,
        ),
    )(flag_arr, x2)
    return out.reshape(orig_shape)


def random_vertical_flip_3d(x, p=0.5, rng=None):
    """Module-equivalent forward: host RNG decides, Pallas kernel applies it."""
    # TODO(synk): the Bernoulli draw is host-side numpy (as in the PyTorch module),
    # not an in-kernel PRNG; only the flip/copy is a Pallas kernel.
    rng = np.random.default_rng() if rng is None else rng
    flip = bool(rng.random() < p)
    return flip_last2_rows(x, int(flip))


if __name__ == "__main__":
    key = jax.random.PRNGKey(0)
    # NCDHW 3D volume: batch=2, channels=4, depth=8, height=16, width=128
    # (lane-dense last dim per the performance feedback).
    x = jax.random.normal(key, (2, 4, 8, 16, 128), dtype=jnp.float32)

    # Exercise both kernel branches deterministically.
    y_flip = jax.block_until_ready(flip_last2_rows(x, 1))
    y_keep = jax.block_until_ready(flip_last2_rows(x, 0))

    np.testing.assert_array_equal(np.asarray(y_flip),
                                  np.asarray(jnp.flip(x, axis=-2)))
    np.testing.assert_array_equal(np.asarray(y_keep), np.asarray(x))

    # Module-like call with a seeded host RNG (matches the PyTorch forward).
    y = jax.block_until_ready(
        random_vertical_flip_3d(x, p=0.5, rng=np.random.default_rng(0)))
    assert y.shape == x.shape

    print("KERNEL_OK")
</pallas_src>

<mosaic_0001>
module attributes {stable_mosaic.version = 11 : i64} {
  func.func @kernel(%arg0: i32, %arg1: memref<1xi32, #tpu.memory_space<smem>>, %arg2: memref<32x16x128xf32, #tpu.memory_space<vmem>>, %arg3: memref<32x16x128xf32, #tpu.memory_space<vmem>>) attributes {dimension_semantics = [#tpu.dimension_semantics<parallel>], iteration_bounds = array<i64: 2>, scalar_prefetch = 1 : i64, scratch_operands = 0 : i64, tpu.core_type = #tpu.core_type<tc>, window_params = [{transform_indices = @transform_0, window_bounds = array<i64: 32, 16, 128>}, {transform_indices = @transform_1, window_bounds = array<i64: 32, 16, 128>}]} {
    %c0 = arith.constant 0 : index
    %0 = memref.load %arg1[%c0] : memref<1xi32, #tpu.memory_space<smem>>
    %c0_i32 = arith.constant 0 : i32
    %1 = arith.cmpi ne, %0, %c0_i32 : i32
    %2 = arith.extui %1 : i1 to i32
    %c0_i32_0 = arith.constant 0 : i32
    %3 = arith.cmpi ne, %2, %c0_i32_0 : i32
    scf.if %3 {
      %c0_4 = arith.constant 0 : index
      %c15 = arith.constant 15 : index
      %c0_5 = arith.constant 0 : index
      %8 = vector.load %arg2[%c0_4, %c15, %c0_5] : memref<32x16x128xf32, #tpu.memory_space<vmem>>, vector<32x1x128xf32>
      %c0_6 = arith.constant 0 : index
      %c0_7 = arith.constant 0 : index
      %c0_8 = arith.constant 0 : index
      %9 = vector.load %arg3[%c0_6, %c0_7, %c0_8] : memref<32x16x128xf32, #tpu.memory_space<vmem>>, vector<32x1x128xf32>
      tpu.vector_store %arg3[%c0_6, %c0_7, %c0_8], %8 {strides = array<i32>} : memref<32x16x128xf32, #tpu.memory_space<vmem>>, vector<32x1x128xf32>,
      %c0_9 = arith.constant 0 : index
      %c14 = arith.constant 14 : index
      %c0_10 = arith.constant 0 : index
      %10 = vector.load %arg2[%c0_9, %c14, %c0_10] : memref<32x16x128xf32, #tpu.memory_space<vmem>>, vector<32x1x128xf32>
      %c0_11 = arith.constant 0 : index
      %c1 = arith.constant 1 : index
      %c0_12 = arith.constant 0 : index
      %11 = vector.load %arg3[%c0_11, %c1, %c0_12] : memref<32x16x128xf32, #tpu.memory_space<vmem>>, vector<32x1x128xf32>
      tpu.vector_store %arg3[%c0_11, %c1, %c0_12], %10 {strides = array<i32>} : memref<32x16x128xf32, #tpu.memory_space<vmem>>, vector<32x1x128xf32>,
      %c0_13 = arith.constant 0 : index
      %c13 = arith.constant 13 : index
      %c0_14 = arith.constant 0 : index
      %12 = vector.load %arg2[%c0_13, %c13, %c0_14] : memref<32x16x128xf32, #tpu.memory_space<vmem>>, vector<32x1x128xf32>
      %c0_15 = arith.constant 0 : index
      %c2 = arith.constant 2 : index
      %c0_16 = arith.constant 0 : index
      %13 = vector.load %arg3[%c0_15, %c2, %c0_16] : memref<32x16x128xf32, #tpu.memory_space<vmem>>, vector<32x1x128xf32>
      tpu.vector_store %arg3[%c0_15, %c2, %c0_16], %12 {strides = array<i32>} : memref<32x16x128xf32, #tpu.memory_space<vmem>>, vector<32x1x128xf32>,
      %c0_17 = arith.constant 0 : index
      %c12 = arith.constant 12 : index
      %c0_18 = arith.constant 0 : index
      %14 = vector.load %arg2[%c0_17, %c12, %c0_18] : memref<32x16x128xf32, #tpu.memory_space<vmem>>, vector<32x1x128xf32>
      %c0_19 = arith.constant 0 : index
      %c3 = arith.constant 3 : index
      %c0_20 = arith.constant 0 : index
      %15 = vector.load %arg3[%c0_19, %c3, %c0_20] : memref<32x16x128xf32, #tpu.memory_space<vmem>>, vector<32x1x128xf32>
      tpu.vector_store %arg3[%c0_19, %c3, %c0_20], %14 {strides = array<i32>} : memref<32x16x128xf32, #tpu.memory_space<vmem>>, vector<32x1x128xf32>,
      %c0_21 = arith.constant 0 : index
      %c11 = arith.constant 11 : index
      %c0_22 = arith.constant 0 : index
      %16 = vector.load %arg2[%c0_21, %c11, %c0_22] : memref<32x16x128xf32, #tpu.memory_space<vmem>>, vector<32x1x128xf32>
      %c0_23 = arith.constant 0 : index
      %c4 = arith.constant 4 : index
      %c0_24 = arith.constant 0 : index
      %17 = vector.load %arg3[%c0_23, %c4, %c0_24] : memref<32x16x128xf32, #tpu.memory_space<vmem>>, vector<32x1x128xf32>
      tpu.vector_store %arg3[%c0_23, %c4, %c0_24], %16 {strides = array<i32>} : memref<32x16x128xf32, #tpu.memory_space<vmem>>, vector<32x1x128xf32>,
      %c0_25 = arith.constant 0 : index
      %c10 = arith.constant 10 : index
      %c0_26 = arith.constant 0 : index
      %18 = vector.load %arg2[%c0_25, %c10, %c0_26] : memref<32x16x128xf32, #tpu.memory_space<vmem>>, vector<32x1x128xf32>
      %c0_27 = arith.constant 0 : index
      %c5 = arith.constant 5 : index
      %c0_28 = arith.constant 0 : index
      %19 = vector.load %arg3[%c0_27, %c5, %c0_28] : memref<32x16x128xf32, #tpu.memory_space<vmem>>, vector<32x1x128xf32>
      tpu.vector_store %arg3[%c0_27, %c5, %c0_28], %18 {strides = array<i32>} : memref<32x16x128xf32, #tpu.memory_space<vmem>>, vector<32x1x128xf32>,
      %c0_29 = arith.constant 0 : index
      %c9 = arith.constant 9 : index
      %c0_30 = arith.constant 0 : index
      %20 = vector.load %arg2[%c0_29, %c9, %c0_30] : memref<32x16x128xf32, #tpu.memory_space<vmem>>, vector<32x1x128xf32>
      %c0_31 = arith.constant 0 : index
      %c6 = arith.constant 6 : index
      %c0_32 = arith.constant 0 : index
      %21 = vector.load %arg3[%c0_31, %c6, %c0_32] : memref<32x16x128xf32, #tpu.memory_space<vmem>>, vector<32x1x128xf32>
      tpu.vector_store %arg3[%c0_31, %c6, %c0_32], %20 {strides = array<i32>} : memref<32x16x128xf32, #tpu.memory_space<vmem>>, vector<32x1x128xf32>,
      %c0_33 = arith.constant 0 : index
      %c8 = arith.constant 8 : index
      %c0_34 = arith.constant 0 : index
      %22 = vector.load %arg2[%c0_33, %c8, %c0_34] : memref<32x16x128xf32, #tpu.memory_space<vmem>>, vector<32x1x128xf32>
      %c0_35 = arith.constant 0 : index
      %c7 = arith.constant 7 : index
      %c0_36 = arith.constant 0 : index
      %23 = vector.load %arg3[%c0_35, %c7, %c0_36] : memref<32x16x128xf32, #tpu.memory_space<vmem>>, vector<32x1x128xf32>
      tpu.vector_store %arg3[%c0_35, %c7, %c0_36], %22 {strides = array<i32>} : memref<32x16x128xf32, #tpu.memory_space<vmem>>, vector<32x1x128xf32>,
      %c0_37 = arith.constant 0 : index
      %c7_38 = arith.constant 7 : index
      %c0_39 = arith.constant 0 : index
      %24 = vector.load %arg2[%c0_37, %c7_38, %c0_39] : memref<32x16x128xf32, #tpu.memory_space<vmem>>, vector<32x1x128xf32>
      %c0_40 = arith.constant 0 : index
      %c8_41 = arith.constant 8 : index
      %c0_42 = arith.constant 0 : index
      %25 = vector.load %arg3[%c0_40, %c8_41, %c0_42] : memref<32x16x128xf32, #tpu.memory_space<vmem>>, vector<32x1x128xf32>
      tpu.vector_store %arg3[%c0_40, %c8_41, %c0_42], %24 {strides = array<i32>} : memref<32x16x128xf32, #tpu.memory_space<vmem>>, vector<32x1x128xf32>,
      %c0_43 = arith.constant 0 : index
      %c6_44 = arith.constant 6 : index
      %c0_45 = arith.constant 0 : index
      %26 = vector.load %arg2[%c0_43, %c6_44, %c0_45] : memref<32x16x128xf32, #tpu.memory_space<vmem>>, vector<32x1x128xf32>
      %c0_46 = arith.constant 0 : index
      %c9_47 = arith.constant 9 : index
      %c0_48 = arith.constant 0 : index
      %27 = vector.load %arg3[%c0_46, %c9_47, %c0_48] : memref<32x16x128xf32, #tpu.memory_space<vmem>>, vector<32x1x128xf32>
      tpu.vector_store %arg3[%c0_46, %c9_47, %c0_48], %26 {strides = array<i32>} : memref<32x16x128xf32, #tpu.memory_space<vmem>>, vector<32x1x128xf32>,
      %c0_49 = arith.constant 0 : index
      %c5_50 = arith.constant 5 : index
      %c0_51 = arith.constant 0 : index
      %28 = vector.load %arg2[%c0_49, %c5_50, %c0_51] : memref<32x16x128xf32, #tpu.memory_space<vmem>>, vector<32x1x128xf32>
      %c0_52 = arith.constant 0 : index
      %c10_53 = arith.constant 10 : index
      %c0_54 = arith.constant 0 : index
      %29 = vector.load %arg3[%c0_52, %c10_53, %c0_54] : memref<32x16x128xf32, #tpu.memory_space<vmem>>, vector<32x1x128xf32>
      tpu.vector_store %arg3[%c0_52, %c10_53, %c0_54], %28 {strides = array<i32>} : memref<32x16x128xf32, #tpu.memory_space<vmem>>, vector<32x1x128xf32>,
      %c0_55 = arith.constant 0 : index
      %c4_56 = arith.constant 4 : index
      %c0_57 = arith.constant 0 : index
      %30 = vector.load %arg2[%c0_55, %c4_56, %c0_57] : memref<32x16x128xf32, #tpu.memory_space<vmem>>, vector<32x1x128xf32>
      %c0_58 = arith.constant 0 : index
      %c11_59 = arith.constant 11 : index
      %c0_60 = arith.constant 0 : index
      %31 = vector.load %arg3[%c0_58, %c11_59, %c0_60] : memref<32x16x128xf32, #tpu.memory_space<vmem>>, vector<32x1x128xf32>
      tpu.vector_store %arg3[%c0_58, %c11_59, %c0_60], %30 {strides = array<i32>} : memref<32x16x128xf32, #tpu.memory_space<vmem>>, vector<32x1x128xf32>,
      %c0_61 = arith.constant 0 : index
      %c3_62 = arith.constant 3 : index
      %c0_63 = arith.constant 0 : index
      %32 = vector.load %arg2[%c0_61, %c3_62, %c0_63] : memref<32x16x128xf32, #tpu.memory_space<vmem>>, vector<32x1x128xf32>
      %c0_64 = arith.constant 0 : index
      %c12_65 = arith.constant 12 : index
      %c0_66 = arith.constant 0 : index
      %33 = vector.load %arg3[%c0_64, %c12_65, %c0_66] : memref<32x16x128xf32, #tpu.memory_space<vmem>>, vector<32x1x128xf32>
      tpu.vector_store %arg3[%c0_64, %c12_65, %c0_66], %32 {strides = array<i32>} : memref<32x16x128xf32, #tpu.memory_space<vmem>>, vector<32x1x128xf32>,
      %c0_67 = arith.constant 0 : index
      %c2_68 = arith.constant 2 : index
      %c0_69 = arith.constant 0 : index
      %34 = vector.load %arg2[%c0_67, %c2_68, %c0_69] : memref<32x16x128xf32, #tpu.memory_space<vmem>>, vector<32x1x128xf32>
      %c0_70 = arith.constant 0 : index
      %c13_71 = arith.constant 13 : index
      %c0_72 = arith.constant 0 : index
      %35 = vector.load %arg3[%c0_70, %c13_71, %c0_72] : memref<32x16x128xf32, #tpu.memory_space<vmem>>, vector<32x1x128xf32>
      tpu.vector_store %arg3[%c0_70, %c13_71, %c0_72], %34 {strides = array<i32>} : memref<32x16x128xf32, #tpu.memory_space<vmem>>, vector<32x1x128xf32>,
      %c0_73 = arith.constant 0 : index
      %c1_74 = arith.constant 1 : index
      %c0_75 = arith.constant 0 : index
      %36 = vector.load %arg2[%c0_73, %c1_74, %c0_75] : memref<32x16x128xf32, #tpu.memory_space<vmem>>, vector<32x1x128xf32>
      %c0_76 = arith.constant 0 : index
      %c14_77 = arith.constant 14 : index
      %c0_78 = arith.constant 0 : index
      %37 = vector.load %arg3[%c0_76, %c14_77, %c0_78] : memref<32x16x128xf32, #tpu.memory_space<vmem>>, vector<32x1x128xf32>
      tpu.vector_store %arg3[%c0_76, %c14_77, %c0_78], %36 {strides = array<i32>} : memref<32x16x128xf32, #tpu.memory_space<vmem>>, vector<32x1x128xf32>,
      %c0_79 = arith.constant 0 : index
      %c0_80 = arith.constant 0 : index
      %c0_81 = arith.constant 0 : index
      %38 = vector.load %arg2[%c0_79, %c0_80, %c0_81] : memref<32x16x128xf32, #tpu.memory_space<vmem>>, vector<32x1x128xf32>
      %c0_82 = arith.constant 0 : index
      %c15_83 = arith.constant 15 : index
      %c0_84 = arith.constant 0 : index
      %39 = vector.load %arg3[%c0_82, %c15_83, %c0_84] : memref<32x16x128xf32, #tpu.memory_space<vmem>>, vector<32x1x128xf32>
      tpu.vector_store %arg3[%c0_82, %c15_83, %c0_84], %38 {strides = array<i32>} : memref<32x16x128xf32, #tpu.memory_space<vmem>>, vector<32x1x128xf32>,
    } else {
    }
    %c0_1 = arith.constant 0 : index
    %4 = memref.load %arg1[%c0_1] : memref<1xi32, #tpu.memory_space<smem>>
    %c0_i32_2 = arith.constant 0 : i32
    %5 = arith.cmpi eq, %4, %c0_i32_2 : i32
    %6 = arith.extui %5 : i1 to i32
    %c0_i32_3 = arith.constant 0 : i32
    %7 = arith.cmpi ne, %6, %c0_i32_3 : i32
    scf.if %7 {
      %c0_4 = arith.constant 0 : index
      %c0_5 = arith.constant 0 : index
      %c0_6 = arith.constant 0 : index
      %8 = vector.load %arg2[%c0_4, %c0_5, %c0_6] : memref<32x16x128xf32, #tpu.memory_space<vmem>>, vector<32x16x128xf32>
      %c0_7 = arith.constant 0 : index
      %c0_8 = arith.constant 0 : index
      %c0_9 = arith.constant 0 : index
      %9 = vector.load %arg3[%c0_7, %c0_8, %c0_9] : memref<32x16x128xf32, #tpu.memory_space<vmem>>, vector<32x16x128xf32>
      tpu.vector_store %arg3[%c0_7, %c0_8, %c0_9], %8 {strides = array<i32>} : memref<32x16x128xf32, #tpu.memory_space<vmem>>, vector<32x16x128xf32>,
    } else {
    }
    return
  }
  func.func @transform_0(%arg0: i32, %arg1: memref<1xi32, #tpu.memory_space<smem>>) -> (i32, i32, i32) {
    %c0_i32 = arith.constant 0 : i32
    %c0_i32_0 = arith.constant 0 : i32
    %c0_i32_1 = arith.constant 0 : i32
    return %arg0, %c0_i32, %c0_i32_0 : i32, i32, i32
  }
  func.func @transform_1(%arg0: i32, %arg1: memref<1xi32, #tpu.memory_space<smem>>) -> (i32, i32, i32) {
    %c0_i32 = arith.constant 0 : i32
    %c0_i32_0 = arith.constant 0 : i32
    %c0_i32_1 = arith.constant 0 : i32
    return %arg0, %c0_i32, %c0_i32_0 : i32, i32, i32
  }
}

</mosaic_0001>

<bundles_post_ra>
// kernel: tpu_custom_call.1
= control target key start
LH: loop header
LB: loop body
LE: loop exit
PB: predicated region body
PF: predicated region fallthrough
CT: control target
= control target key end

     0   :  { %s2891_s0 = inlined_call_operand.<no memory space> [shape: s32[1], index: 0, kind: input, shape index: {}]   ;;  %s2892_s1 = inlined_call_operand.hbm [shape: f32[64,16,128], index: 1, kind: input, shape index: {}]   ;;  %s2893_s2 = inlined_call_operand.hbm [shape: f32[64,16,128], index: 2, kind: output, shape index: {}]  }
   0x1   :  { %7 = sst [smem:[#allocation3]] %s2891_s0 }
   0x2   :  { %8 = vsyncpa [#allocation5], 0 }
   0x3   :  { %10 = vsyncpa [#allocation5 + $0x1], 0 }
   0x4   :  { %11 = vsyncpa [#allocation6], 0 }
   0x5   :  { %13 = vsyncpa [#allocation6 + $0x1], 0  ;;  %s1580_s11 = smov 0   ;;  %s1582_s12 = smov 0  }
   0x6   :  { %s1584_s13 = smov 0   ;;  %s1586_s14 = smov 0  }
   0x7 LB: > { %s1601_s0 = sadd.s32 4294967295, %s1554_s14   ;;  %s1390_s15 = sadd.s32 4294967294, %s1554_s14   ;;  %s1554_s14 = sphi %s1586_s14, %s2908_s14   ;;  %s1550_s13 = sphi %s1584_s13, %s2907_s13   ;;  %s1546_s12 = sphi %s1582_s12, %s2906_s12   ;;  %s1542_s11 = sphi %s1580_s11, %s2905_s11  }
   0x8   : > { %s1605_s16 = sadd.s32 1, %s1554_s14   ;;  %s26_s17 = sadd.s32 1, %s1550_s13 }
   0x9   : > { %s23_s18 = ssub.s32 %s1554_s14, %s1605_s16  ;;  %p33_p0 = scmp.ne.s32.totalorder %s1550_s13, %s1546_s12 }
   0xa   : > { %p24_p1 = scmp.eq.s32.totalorder %s23_s18, 0  ;;  %p34_p2 = scmp.eq.s32.totalorder %s1554_s14, 0 }
   0xb   : > { %p39_p3 = scmp.ne.s32.totalorder %s1546_s12, %s1542_s11  ;;  %p40_p4 = scmp.eq.s32.totalorder %s1601_s0, 0 }
   0xc   : > { %s1617_s19 = scalar_select %p24_p1, %s1550_s13, %s26_s17  }
   0xd   : > { %p1619_p5 = por %p34_p2, %p33_p0  ;;  %p1623_p6 = por %p40_p4, %p39_p3 }
   0xe   : > { %p63_p7 = scmp.eq.s32.totalorder %s1601_s0, 1  ;;  %p69_p8 = scmp.eq.s32.totalorder %s1390_s15, 1 }
   0xf   : > { %s2897_s21 = scalar_select %p1623_p6, 1, 0 }
  0x10   : > { %p1424_p10 = scmp.lt.s32.totalorder %s1554_s14, 2  ;;  %p1630_p11 = por %p63_p7, %p33_p0 }
  0x11   : > { %p1634_p12 = por %p69_p8, %p39_p3  ;;  %s89_s24 = sand.u32 1, %s1550_s13  }
  0x12   : > { %s2898_s22 = scalar_select %p1630_p11, 1, 0 }
  0x13   : > { %s2899_s23 = scalar_select %p1634_p12, 1, 0 }
  0x14   : > { %s1409_s25 = sshll.u32 %s1554_s14, 13  ;;  %s1393_s26 = sshll.u32 %s89_s24, 9 }
  0x15   : > { %s1643_s29 = scalar_lea.hbm %s2892_s1, %s1409_s25  ;;  %s93_s30 = scalar_lea.vmem [#allocation4], %s1393_s26 }
  0x16   : > { %s101_s3 = sshll.u32 %s93_s30, 4  ;;  %p1647_p13 = pnand %p1424_p10, %p1619_p5  ;;  %s1651_s3 = int_to_ptr.vmem [resolvable:$true] %s101_s3 }
  0x17   : > { %s1653_s5 = scalar_lea.sflag [#allocation5], %s89_s24  ;;  %s1462_s6 = scalar_lea.hbm %s1643_s29, 8192 }
  0x18   : > { %p1463_p0 = scmp.ne.s32.totalorder %s1643_s29, %s1462_s6  ;;  %p1464_p1 = pneg %p1647_p13 }
  0x19   : > { %s1467_s9 = scalar_lea.hbm %s2892_s1, 16384  ;;  %p1468_p4 = scmp.lt.s32.totalorder %s1643_s29, %s2892_s1 }
  0x1a   : > { %p1465_p2 = pnand %p1464_p1, %p1463_p0  ;;  %p1469_p5 = scmp.lt.s32.totalorder %s1467_s9, %s1462_s6 }
  0x1c   : > { %p1466_p3 = pneg %p1465_p2  ;;  %p1470_p7 = por %p1469_p5, %p1468_p4 }
  0x1e   : > { %p1471_p8 = pnand %p1470_p7, %p1466_p3 }
  0x20   : > { %1474 = shalt.err (!%p1471_p8)
}
  0x21   : > { %s1475_s17 = scalar_lea.vmem %s1651_s3, 8192  ;;  %s1556_s18 = smov [#allocation4]  }
  0x22   : > { %p1476_p10 = scmp.ne.s32.totalorder %s1651_s3, %s1475_s17  ;;  %s1480_s20 = sshll.u32 %s1556_s18, 4  ;;  %s1481_s20 = int_to_ptr.vmem [resolvable:$false] %s1480_s20 }
  0x23   : > { %s1482_s24 = scalar_lea.vmem %s1481_s20, 16384  ;;  %p1483_p2 = scmp.lt.s32.totalorder %s1651_s3, %s1481_s20 }
  0x24   : > { %p1478_p9 = pnand %p1476_p10, %p1464_p1  ;;  %p1484_p12 = scmp.lt.s32.totalorder %s1482_s24, %s1475_s17 }
  0x26   : > { %p1479_p0 = pneg %p1478_p9  ;;  %p1485_p11 = por %p1484_p12, %p1483_p2 }
  0x28   : > { %p1486_p6 = pnand %p1485_p11, %p1479_p0 }
  0x2a   : > { %1489 = shalt.err (!%p1486_p6)
}
  0x2b   : > { %s1557_s25 = smov 128   ;;  %s1558_s26 = smov 8  }
  0x2c   : > { %1419 = dma.hbm_to_vmem [thread:$0]  (!%p1647_p13), %s1643_s29, 8192, %s1651_s3, %s1653_s5, %s1557_s25, %s1557_s25, %s1558_s26  }
  0x2d   : > { %p1397_p9 = scmp.ge.s32.totalorder %s1554_s14, 1  ;;  %p109_p1 = scmp.lt.s32.totalorder %s1554_s14, 3 }
  0x2f   : > { %p110_p3 = pnand %p1397_p9, %p109_p1 }
  0x30   : > { %s1677_s27 = sand.u32 (!%p110_p3), 1, %s1546_s12   ;;  %p2901_p6 = scmp.ne.s32.totalorder (!%p110_p3), %s2897_s21, 0 }
  0x31   : > { %113 = sbr.rel (%p110_p3) target bundleno = 481 (0x1e1), region = 24  ;;  %s1398_s28 = sshll.u32 (!%p110_p3), %s1677_s27, 9 }
  0x32   : > { %s116_s30 = scalar_lea.sflag (!%p110_p3), [#allocation5], %s1677_s27  ;;  %s1681_s6 = scalar_lea.vmem (!%p110_p3), [#allocation4], %s1398_s28 }
  0x36   : > { %1533 = dma.done.wait (%p2901_p6), %s116_s30, 8192  }
  0x37   : > { %1535 = vsyncadd (%p2901_p6), %s116_s30, 4294959104  ;;  %s140_s29 = sld [smem:[#allocation3]]  ;;  %s1687_s3 = scalar_lea.vmem [#allocation7], %s1398_s28 }
  0x3d   : > { %p1400_p11 = scmp.eq.s32.totalorder %s140_s29, 0 }
  0x3f   : > { %144 = sbr.rel (%p1400_p11) target bundleno = 410 (0x19a), region = 32 }
  0x44   : > { %v145_v0 = vld [vmem:[%s1681_s6 + $0xf] sm:$0x1]  ;;  %v146_v1 = vld [vmem:[%s1681_s6 + $0x1f] sm:$0x1]  ;;  %v209_v32 = vld [vmem:[%s1681_s6 + $0xe] sm:$0x1] }
  0x45   : > { %v147_v2 = vld [vmem:[%s1681_s6 + $0x2f] sm:$0x1]  ;;  %177 = vst [vmem:[%s1687_s3] sm:$0x1] %v145_v0  ;;  %178 = vst [vmem:[%s1687_s3 + $0x10] sm:$0x1] %v146_v1 }
  0x46   : > { %179 = vst [vmem:[%s1687_s3 + $0x20] sm:$0x1] %v147_v2  ;;  %v148_v3 = vld [vmem:[%s1681_s6 + $0x3f] sm:$0x1]  ;;  %v149_v4 = vld [vmem:[%s1681_s6 + $0x4f] sm:$0x1] }
  0x47   : > { %v150_v5 = vld [vmem:[%s1681_s6 + $0x5f] sm:$0x1]  ;;  %180 = vst [vmem:[%s1687_s3 + $0x30] sm:$0x1] %v148_v3  ;;  %181 = vst [vmem:[%s1687_s3 + $0x40] sm:$0x1] %v149_v4 }
  0x48   : > { %182 = vst [vmem:[%s1687_s3 + $0x50] sm:$0x1] %v150_v5  ;;  %v151_v6 = vld [vmem:[%s1681_s6 + $0x6f] sm:$0x1]  ;;  %v152_v7 = vld [vmem:[%s1681_s6 + $0x7f] sm:$0x1] }
  0x49   : > { %v153_v8 = vld [vmem:[%s1681_s6 + $0x8f] sm:$0x1]  ;;  %183 = vst [vmem:[%s1687_s3 + $0x60] sm:$0x1] %v151_v6  ;;  %184 = vst [vmem:[%s1687_s3 + $0x70] sm:$0x1] %v152_v7 }
  0x4a   : > { %185 = vst [vmem:[%s1687_s3 + $0x80] sm:$0x1] %v153_v8  ;;  %v154_v9 = vld [vmem:[%s1681_s6 + $0x9f] sm:$0x1]  ;;  %v155_v10 = vld [vmem:[%s1681_s6 + $0xaf] sm:$0x1] }
  0x4b   : > { %v156_v11 = vld [vmem:[%s1681_s6 + $0xbf] sm:$0x1]  ;;  %186 = vst [vmem:[%s1687_s3 + $0x90] sm:$0x1] %v154_v9  ;;  %187 = vst [vmem:[%s1687_s3 + $0xa0] sm:$0x1] %v155_v10 }
  0x4c   : > { %188 = vst [vmem:[%s1687_s3 + $0xb0] sm:$0x1] %v156_v11  ;;  %v157_v12 = vld [vmem:[%s1681_s6 + $0xcf] sm:$0x1]  ;;  %v158_v13 = vld [vmem:[%s1681_s6 + $0xdf] sm:$0x1] }
  0x4d   : > { %v159_v14 = vld [vmem:[%s1681_s6 + $0xef] sm:$0x1]  ;;  %189 = vst [vmem:[%s1687_s3 + $0xc0] sm:$0x1] %v157_v12  ;;  %190 = vst [vmem:[%s1687_s3 + $0xd0] sm:$0x1] %v158_v13 }
  0x4e   : > { %191 = vst [vmem:[%s1687_s3 + $0xe0] sm:$0x1] %v159_v14  ;;  %v160_v15 = vld [vmem:[%s1681_s6 + $0xff] sm:$0x1]  ;;  %v161_v16 = vld [vmem:[%s1681_s6 + $0x10f] sm:$0x1] }
  0x4f   : > { %v162_v17 = vld [vmem:[%s1681_s6 + $0x11f] sm:$0x1]  ;;  %192 = vst [vmem:[%s1687_s3 + $0xf0] sm:$0x1] %v160_v15  ;;  %193 = vst [vmem:[%s1687_s3 + $0x100] sm:$0x1] %v161_v16 }
  0x50   : > { %194 = vst [vmem:[%s1687_s3 + $0x110] sm:$0x1] %v162_v17  ;;  %v163_v18 = vld [vmem:[%s1681_s6 + $0x12f] sm:$0x1]  ;;  %v164_v19 = vld [vmem:[%s1681_s6 + $0x13f] sm:$0x1] }
  0x51   : > { %v165_v20 = vld [vmem:[%s1681_s6 + $0x14f] sm:$0x1]  ;;  %195 = vst [vmem:[%s1687_s3 + $0x120] sm:$0x1] %v163_v18  ;;  %196 = vst [vmem:[%s1687_s3 + $0x130] sm:$0x1] %v164_v19 }
  0x52   : > { %197 = vst [vmem:[%s1687_s3 + $0x140] sm:$0x1] %v165_v20  ;;  %v166_v21 = vld [vmem:[%s1681_s6 + $0x15f] sm:$0x1]  ;;  %v167_v22 = vld [vmem:[%s1681_s6 + $0x16f] sm:$0x1] }
  0x53   : > { %v168_v23 = vld [vmem:[%s1681_s6 + $0x17f] sm:$0x1]  ;;  %198 = vst [vmem:[%s1687_s3 + $0x150] sm:$0x1] %v166_v21  ;;  %199 = vst [vmem:[%s1687_s3 + $0x160] sm:$0x1] %v167_v22 }
  0x54   : > { %200 = vst [vmem:[%s1687_s3 + $0x170] sm:$0x1] %v168_v23  ;;  %v169_v24 = vld [vmem:[%s1681_s6 + $0x18f] sm:$0x1]  ;;  %v170_v25 = vld [vmem:[%s1681_s6 + $0x19f] sm:$0x1] }
  0x55   : > { %v171_v26 = vld [vmem:[%s1681_s6 + $0x1af] sm:$0x1]  ;;  %201 = vst [vmem:[%s1687_s3 + $0x180] sm:$0x1] %v169_v24  ;;  %202 = vst [vmem:[%s1687_s3 + $0x190] sm:$0x1] %v170_v25 }
  0x56   : > { %203 = vst [vmem:[%s1687_s3 + $0x1a0] sm:$0x1] %v171_v26  ;;  %v172_v27 = vld [vmem:[%s1681_s6 + $0x1bf] sm:$0x1]  ;;  %v173_v28 = vld [vmem:[%s1681_s6 + $0x1cf] sm:$0x1] }
  0x57   : > { %v174_v29 = vld [vmem:[%s1681_s6 + $0x1df] sm:$0x1]  ;;  %204 = vst [vmem:[%s1687_s3 + $0x1b0] sm:$0x1] %v172_v27  ;;  %205 = vst [vmem:[%s1687_s3 + $0x1c0] sm:$0x1] %v173_v28 }
  0x58   : > { %206 = vst [vmem:[%s1687_s3 + $0x1d0] sm:$0x1] %v174_v29  ;;  %v175_v30 = vld [vmem:[%s1681_s6 + $0x1ef] sm:$0x1]  ;;  %v176_v31 = vld [vmem:[%s1681_s6 + $0x1ff] sm:$0x1] }
  0x59   : > { %207 = vst [vmem:[%s1687_s3 + $0x1e0] sm:$0x1] %v175_v30  ;;  %208 = vst [vmem:[%s1687_s3 + $0x1f0] sm:$0x1] %v176_v31  ;;  %v210_v33 = vld [vmem:[%s1681_s6 + $0x1e] sm:$0x1] }
  0x5a   : > { %241 = vst [vmem:[%s1687_s3 + $0x1] sm:$0x1] %v209_v32  ;;  %v211_v34 = vld [vmem:[%s1681_s6 + $0x2e] sm:$0x1]  ;;  %v212_v35 = vld [vmem:[%s1681_s6 + $0x3e] sm:$0x1] }
  0x5b   : > { %242 = vst [vmem:[%s1687_s3 + $0x11] sm:$0x1] %v210_v33  ;;  %243 = vst [vmem:[%s1687_s3 + $0x21] sm:$0x1] %v211_v34  ;;  %v213_v36 = vld [vmem:[%s1681_s6 + $0x4e] sm:$0x1] }
  0x5c   : > { %244 = vst [vmem:[%s1687_s3 + $0x31] sm:$0x1] %v212_v35  ;;  %v214_v37 = vld [vmem:[%s1681_s6 + $0x5e] sm:$0x1]  ;;  %v215_v38 = vld [vmem:[%s1681_s6 + $0x6e] sm:$0x1] }
  0x5d   : > { %245 = vst [vmem:[%s1687_s3 + $0x41] sm:$0x1] %v213_v36  ;;  %246 = vst [vmem:[%s1687_s3 + $0x51] sm:$0x1] %v214_v37  ;;  %v216_v39 = vld [vmem:[%s1681_s6 + $0x7e] sm:$0x1] }
  0x5e   : > { %247 = vst [vmem:[%s1687_s3 + $0x61] sm:$0x1] %v215_v38  ;;  %v217_v40 = vld [vmem:[%s1681_s6 + $0x8e] sm:$0x1]  ;;  %v218_v41 = vld [vmem:[%s1681_s6 + $0x9e] sm:$0x1] }
  0x5f   : > { %248 = vst [vmem:[%s1687_s3 + $0x71] sm:$0x1] %v216_v39  ;;  %249 = vst [vmem:[%s1687_s3 + $0x81] sm:$0x1] %v217_v40  ;;  %v219_v42 = vld [vmem:[%s1681_s6 + $0xae] sm:$0x1] }
  0x60   : > { %250 = vst [vmem:[%s1687_s3 + $0x91] sm:$0x1] %v218_v41  ;;  %v220_v43 = vld [vmem:[%s1681_s6 + $0xbe] sm:$0x1]  ;;  %v221_v44 = vld [vmem:[%s1681_s6 + $0xce] sm:$0x1] }
  0x61   : > { %251 = vst [vmem:[%s1687_s3 + $0xa1] sm:$0x1] %v219_v42  ;;  %252 = vst [vmem:[%s1687_s3 + $0xb1] sm:$0x1] %v220_v43  ;;  %v222_v45 = vld [vmem:[%s1681_s6 + $0xde] sm:$0x1] }
  0x62   : > { %253 = vst [vmem:[%s1687_s3 + $0xc1] sm:$0x1] %v221_v44  ;;  %v223_v46 = vld [vmem:[%s1681_s6 + $0xee] sm:$0x1]  ;;  %v224_v47 = vld [vmem:[%s1681_s6 + $0xfe] sm:$0x1] }
  0x63   : > { %254 = vst [vmem:[%s1687_s3 + $0xd1] sm:$0x1] %v222_v45  ;;  %255 = vst [vmem:[%s1687_s3 + $0xe1] sm:$0x1] %v223_v46  ;;  %v225_v48 = vld [vmem:[%s1681_s6 + $0x10e] sm:$0x1] }
  0x64   : > { %256 = vst [vmem:[%s1687_s3 + $0xf1] sm:$0x1] %v224_v47  ;;  %v226_v49 = vld [vmem:[%s1681_s6 + $0x11e] sm:$0x1]  ;;  %v227_v50 = vld [vmem:[%s1681_s6 + $0x12e] sm:$0x1] }
  0x65   : > { %257 = vst [vmem:[%s1687_s3 + $0x101] sm:$0x1] %v225_v48  ;;  %258 = vst [vmem:[%s1687_s3 + $0x111] sm:$0x1] %v226_v49  ;;  %v228_v51 = vld [vmem:[%s1681_s6 + $0x13e] sm:$0x1] }
  0x66   : > { %259 = vst [vmem:[%s1687_s3 + $0x121] sm:$0x1] %v227_v50  ;;  %v229_v52 = vld [vmem:[%s1681_s6 + $0x14e] sm:$0x1]  ;;  %v230_v53 = vld [vmem:[%s1681_s6 + $0x15e] sm:$0x1] }
  0x67   : > { %260 = vst [vmem:[%s1687_s3 + $0x131] sm:$0x1] %v228_v51  ;;  %261 = vst [vmem:[%s1687_s3 + $0x141] sm:$0x1] %v229_v52  ;;  %v231_v54 = vld [vmem:[%s1681_s6 + $0x16e] sm:$0x1] }
  0x68   : > { %262 = vst [vmem:[%s1687_s3 + $0x151] sm:$0x1] %v230_v53  ;;  %v232_v55 = vld [vmem:[%s1681_s6 + $0x17e] sm:$0x1]  ;;  %v233_v56 = vld [vmem:[%s1681_s6 + $0x18e] sm:$0x1] }
  0x69   : > { %263 = vst [vmem:[%s1687_s3 + $0x161] sm:$0x1] %v231_v54  ;;  %264 = vst [vmem:[%s1687_s3 + $0x171] sm:$0x1] %v232_v55  ;;  %v234_v57 = vld [vmem:[%s1681_s6 + $0x19e] sm:$0x1] }
  0x6a   : > { %265 = vst [vmem:[%s1687_s3 + $0x181] sm:$0x1] %v233_v56  ;;  %v235_v58 = vld [vmem:[%s1681_s6 + $0x1ae] sm:$0x1]  ;;  %v236_v59 = vld [vmem:[%s1681_s6 + $0x1be] sm:$0x1] }
  0x6b   : > { %266 = vst [vmem:[%s1687_s3 + $0x191] sm:$0x1] %v234_v57  ;;  %267 = vst [vmem:[%s1687_s3 + $0x1a1] sm:$0x1] %v235_v58  ;;  %v237_v60 = vld [vmem:[%s1681_s6 + $0x1ce] sm:$0x1] }
  0x6c   : > { %268 = vst [vmem:[%s1687_s3 + $0x1b1] sm:$0x1] %v236_v59  ;;  %v238_v61 = vld [vmem:[%s1681_s6 + $0x1de] sm:$0x1]  ;;  %v239_v62 = vld [vmem:[%s1681_s6 + $0x1ee] sm:$0x1] }
  0x6d   : > { %269 = vst [vmem:[%s1687_s3 + $0x1c1] sm:$0x1] %v237_v60  ;;  %270 = vst [vmem:[%s1687_s3 + $0x1d1] sm:$0x1] %v238_v61  ;;  %v240_v63 = vld [vmem:[%s1681_s6 + $0x1fe] sm:$0x1] }
  0x6e   : > { %271 = vst [vmem:[%s1687_s3 + $0x1e1] sm:$0x1] %v239_v62  ;;  %v273_v0 = vld [vmem:[%s1681_s6 + $0xd] sm:$0x1]  ;;  %v274_v1 = vld [vmem:[%s1681_s6 + $0x1d] sm:$0x1] }
  0x6f   : > { %272 = vst [vmem:[%s1687_s3 + $0x1f1] sm:$0x1] %v240_v63  ;;  %305 = vst [vmem:[%s1687_s3 + $0x2] sm:$0x1] %v273_v0  ;;  %v275_v2 = vld [vmem:[%s1681_s6 + $0x2d] sm:$0x1] }
  0x70   : > { %306 = vst [vmem:[%s1687_s3 + $0x12] sm:$0x1] %v274_v1  ;;  %v276_v3 = vld [vmem:[%s1681_s6 + $0x3d] sm:$0x1]  ;;  %v277_v4 = vld [vmem:[%s1681_s6 + $0x4d] sm:$0x1] }
  0x71   : > { %307 = vst [vmem:[%s1687_s3 + $0x22] sm:$0x1] %v275_v2  ;;  %308 = vst [vmem:[%s1687_s3 + $0x32] sm:$0x1] %v276_v3  ;;  %v278_v5 = vld [vmem:[%s1681_s6 + $0x5d] sm:$0x1] }
  0x72   : > { %309 = vst [vmem:[%s1687_s3 + $0x42] sm:$0x1] %v277_v4  ;;  %v279_v6 = vld [vmem:[%s1681_s6 + $0x6d] sm:$0x1]  ;;  %v280_v7 = vld [vmem:[%s1681_s6 + $0x7d] sm:$0x1] }
  0x73   : > { %310 = vst [vmem:[%s1687_s3 + $0x52] sm:$0x1] %v278_v5  ;;  %311 = vst [vmem:[%s1687_s3 + $0x62] sm:$0x1] %v279_v6  ;;  %v281_v8 = vld [vmem:[%s1681_s6 + $0x8d] sm:$0x1] }
  0x74   : > { %312 = vst [vmem:[%s1687_s3 + $0x72] sm:$0x1] %v280_v7  ;;  %v282_v9 = vld [vmem:[%s1681_s6 + $0x9d] sm:$0x1]  ;;  %v283_v10 = vld [vmem:[%s1681_s6 + $0xad] sm:$0x1] }
  0x75   : > { %313 = vst [vmem:[%s1687_s3 + $0x82] sm:$0x1] %v281_v8  ;;  %314 = vst [vmem:[%s1687_s3 + $0x92] sm:$0x1] %v282_v9  ;;  %v284_v11 = vld [vmem:[%s1681_s6 + $0xbd] sm:$0x1] }
  0x76   : > { %315 = vst [vmem:[%s1687_s3 + $0xa2] sm:$0x1] %v283_v10  ;;  %v285_v12 = vld [vmem:[%s1681_s6 + $0xcd] sm:$0x1]  ;;  %v286_v13 = vld [vmem:[%s1681_s6 + $0xdd] sm:$0x1] }
  0x77   : > { %316 = vst [vmem:[%s1687_s3 + $0xb2] sm:$0x1] %v284_v11  ;;  %317 = vst [vmem:[%s1687_s3 + $0xc2] sm:$0x1] %v285_v12  ;;  %v287_v14 = vld [vmem:[%s1681_s6 + $0xed] sm:$0x1] }
  0x78   : > { %318 = vst [vmem:[%s1687_s3 + $0xd2] sm:$0x1] %v286_v13  ;;  %v288_v15 = vld [vmem:[%s1681_s6 + $0xfd] sm:$0x1]  ;;  %v289_v16 = vld [vmem:[%s1681_s6 + $0x10d] sm:$0x1] }
  0x79   : > { %319 = vst [vmem:[%s1687_s3 + $0xe2] sm:$0x1] %v287_v14  ;;  %320 = vst [vmem:[%s1687_s3 + $0xf2] sm:$0x1] %v288_v15  ;;  %v290_v17 = vld [vmem:[%s1681_s6 + $0x11d] sm:$0x1] }
  0x7a   : > { %321 = vst [vmem:[%s1687_s3 + $0x102] sm:$0x1] %v289_v16  ;;  %v291_v18 = vld [vmem:[%s1681_s6 + $0x12d] sm:$0x1]  ;;  %v292_v19 = vld [vmem:[%s1681_s6 + $0x13d] sm:$0x1] }
  0x7b   : > { %322 = vst [vmem:[%s1687_s3 + $0x112] sm:$0x1] %v290_v17  ;;  %323 = vst [vmem:[%s1687_s3 + $0x122] sm:$0x1] %v291_v18  ;;  %v293_v20 = vld [vmem:[%s1681_s6 + $0x14d] sm:$0x1] }
  0x7c   : > { %324 = vst [vmem:[%s1687_s3 + $0x132] sm:$0x1] %v292_v19  ;;  %v294_v21 = vld [vmem:[%s1681_s6 + $0x15d] sm:$0x1]  ;;  %v295_v22 = vld [vmem:[%s1681_s6 + $0x16d] sm:$0x1] }
  0x7d   : > { %325 = vst [vmem:[%s1687_s3 + $0x142] sm:$0x1] %v293_v20  ;;  %326 = vst [vmem:[%s1687_s3 + $0x152] sm:$0x1] %v294_v21  ;;  %v296_v23 = vld [vmem:[%s1681_s6 + $0x17d] sm:$0x1] }
  0x7e   : > { %327 = vst [vmem:[%s1687_s3 + $0x162] sm:$0x1] %v295_v22  ;;  %v297_v24 = vld [vmem:[%s1681_s6 + $0x18d] sm:$0x1]  ;;  %v298_v25 = vld [vmem:[%s1681_s6 + $0x19d] sm:$0x1] }
  0x7f   : > { %328 = vst [vmem:[%s1687_s3 + $0x172] sm:$0x1] %v296_v23  ;;  %329 = vst [vmem:[%s1687_s3 + $0x182] sm:$0x1] %v297_v24  ;;  %v299_v26 = vld [vmem:[%s1681_s6 + $0x1ad] sm:$0x1] }
  0x80   : > { %330 = vst [vmem:[%s1687_s3 + $0x192] sm:$0x1] %v298_v25  ;;  %v300_v27 = vld [vmem:[%s1681_s6 + $0x1bd] sm:$0x1]  ;;  %v301_v28 = vld [vmem:[%s1681_s6 + $0x1cd] sm:$0x1] }
  0x81   : > { %331 = vst [vmem:[%s1687_s3 + $0x1a2] sm:$0x1] %v299_v26  ;;  %332 = vst [vmem:[%s1687_s3 + $0x1b2] sm:$0x1] %v300_v27  ;;  %v302_v29 = vld [vmem:[%s1681_s6 + $0x1dd] sm:$0x1] }
  0x82   : > { %333 = vst [vmem:[%s1687_s3 + $0x1c2] sm:$0x1] %v301_v28  ;;  %v303_v30 = vld [vmem:[%s1681_s6 + $0x1ed] sm:$0x1]  ;;  %v304_v31 = vld [vmem:[%s1681_s6 + $0x1fd] sm:$0x1] }
  0x83   : > { %334 = vst [vmem:[%s1687_s3 + $0x1d2] sm:$0x1] %v302_v29  ;;  %335 = vst [vmem:[%s1687_s3 + $0x1e2] sm:$0x1] %v303_v30  ;;  %v337_v32 = vld [vmem:[%s1681_s6 + $0xc] sm:$0x1] }
  0x84   : > { %336 = vst [vmem:[%s1687_s3 + $0x1f2] sm:$0x1] %v304_v31  ;;  %v338_v33 = vld [vmem:[%s1681_s6 + $0x1c] sm:$0x1]  ;;  %v339_v34 = vld [vmem:[%s1681_s6 + $0x2c] sm:$0x1] }
  0x85   : > { %369 = vst [vmem:[%s1687_s3 + $0x3] sm:$0x1] %v337_v32  ;;  %370 = vst [vmem:[%s1687_s3 + $0x13] sm:$0x1] %v338_v33  ;;  %v340_v35 = vld [vmem:[%s1681_s6 + $0x3c] sm:$0x1] }
  0x86   : > { %371 = vst [vmem:[%s1687_s3 + $0x23] sm:$0x1] %v339_v34  ;;  %v341_v36 = vld [vmem:[%s1681_s6 + $0x4c] sm:$0x1]  ;;  %v342_v37 = vld [vmem:[%s1681_s6 + $0x5c] sm:$0x1] }
  0x87   : > { %372 = vst [vmem:[%s1687_s3 + $0x33] sm:$0x1] %v340_v35  ;;  %373 = vst [vmem:[%s1687_s3 + $0x43] sm:$0x1] %v341_v36  ;;  %v343_v38 = vld [vmem:[%s1681_s6 + $0x6c] sm:$0x1] }
  0x88   : > { %374 = vst [vmem:[%s1687_s3 + $0x53] sm:$0x1] %v342_v37  ;;  %v344_v39 = vld [vmem:[%s1681_s6 + $0x7c] sm:$0x1]  ;;  %v345_v40 = vld [vmem:[%s1681_s6 + $0x8c] sm:$0x1] }
  0x89   : > { %375 = vst [vmem:[%s1687_s3 + $0x63] sm:$0x1] %v343_v38  ;;  %376 = vst [vmem:[%s1687_s3 + $0x73] sm:$0x1] %v344_v39  ;;  %v346_v41 = vld [vmem:[%s1681_s6 + $0x9c] sm:$0x1] }
  0x8a   : > { %377 = vst [vmem:[%s1687_s3 + $0x83] sm:$0x1] %v345_v40  ;;  %v347_v42 = vld [vmem:[%s1681_s6 + $0xac] sm:$0x1]  ;;  %v348_v43 = vld [vmem:[%s1681_s6 + $0xbc] sm:$0x1] }
  0x8b   : > { %378 = vst [vmem:[%s1687_s3 + $0x93] sm:$0x1] %v346_v41  ;;  %379 = vst [vmem:[%s1687_s3 + $0xa3] sm:$0x1] %v347_v42  ;;  %v349_v44 = vld [vmem:[%s1681_s6 + $0xcc] sm:$0x1] }
  0x8c   : > { %380 = vst [vmem:[%s1687_s3 + $0xb3] sm:$0x1] %v348_v43  ;;  %v350_v45 = vld [vmem:[%s1681_s6 + $0xdc] sm:$0x1]  ;;  %v351_v46 = vld [vmem:[%s1681_s6 + $0xec] sm:$0x1] }
  0x8d   : > { %381 = vst [vmem:[%s1687_s3 + $0xc3] sm:$0x1] %v349_v44  ;;  %382 = vst [vmem:[%s1687_s3 + $0xd3] sm:$0x1] %v350_v45  ;;  %v352_v47 = vld [vmem:[%s1681_s6 + $0xfc] sm:$0x1] }
  0x8e   : > { %383 = vst [vmem:[%s1687_s3 + $0xe3] sm:$0x1] %v351_v46  ;;  %v353_v48 = vld [vmem:[%s1681_s6 + $0x10c] sm:$0x1]  ;;  %v354_v49 = vld [vmem:[%s1681_s6 + $0x11c] sm:$0x1] }
  0x8f   : > { %384 = vst [vmem:[%s1687_s3 + $0xf3] sm:$0x1] %v352_v47  ;;  %385 = vst [vmem:[%s1687_s3 + $0x103] sm:$0x1] %v353_v48  ;;  %v355_v50 = vld [vmem:[%s1681_s6 + $0x12c] sm:$0x1] }
  0x90   : > { %386 = vst [vmem:[%s1687_s3 + $0x113] sm:$0x1] %v354_v49  ;;  %v356_v51 = vld [vmem:[%s1681_s6 + $0x13c] sm:$0x1]  ;;  %v357_v52 = vld [vmem:[%s1681_s6 + $0x14c] sm:$0x1] }
  0x91   : > { %387 = vst [vmem:[%s1687_s3 + $0x123] sm:$0x1] %v355_v50  ;;  %388 = vst [vmem:[%s1687_s3 + $0x133] sm:$0x1] %v356_v51  ;;  %v358_v53 = vld [vmem:[%s1681_s6 + $0x15c] sm:$0x1] }
  0x92   : > { %389 = vst [vmem:[%s1687_s3 + $0x143] sm:$0x1] %v357_v52  ;;  %v359_v54 = vld [vmem:[%s1681_s6 + $0x16c] sm:$0x1]  ;;  %v360_v55 = vld [vmem:[%s1681_s6 + $0x17c] sm:$0x1] }
  0x93   : > { %390 = vst [vmem:[%s1687_s3 + $0x153] sm:$0x1] %v358_v53  ;;  %391 = vst [vmem:[%s1687_s3 + $0x163] sm:$0x1] %v359_v54  ;;  %v361_v56 = vld [vmem:[%s1681_s6 + $0x18c] sm:$0x1] }
  0x94   : > { %392 = vst [vmem:[%s1687_s3 + $0x173] sm:$0x1] %v360_v55  ;;  %v362_v57 = vld [vmem:[%s1681_s6 + $0x19c] sm:$0x1]  ;;  %v363_v58 = vld [vmem:[%s1681_s6 + $0x1ac] sm:$0x1] }
  0x95   : > { %393 = vst [vmem:[%s1687_s3 + $0x183] sm:$0x1] %v361_v56  ;;  %394 = vst [vmem:[%s1687_s3 + $0x193] sm:$0x1] %v362_v57  ;;  %v364_v59 = vld [vmem:[%s1681_s6 + $0x1bc] sm:$0x1] }
  0x96   : > { %395 = vst [vmem:[%s1687_s3 + $0x1a3] sm:$0x1] %v363_v58  ;;  %v365_v60 = vld [vmem:[%s1681_s6 + $0x1cc] sm:$0x1]  ;;  %v366_v61 = vld [vmem:[%s1681_s6 + $0x1dc] sm:$0x1] }
  0x97   : > { %396 = vst [vmem:[%s1687_s3 + $0x1b3] sm:$0x1] %v364_v59  ;;  %397 = vst [vmem:[%s1687_s3 + $0x1c3] sm:$0x1] %v365_v60  ;;  %v367_v62 = vld [vmem:[%s1681_s6 + $0x1ec] sm:$0x1] }
  0x98   : > { %398 = vst [vmem:[%s1687_s3 + $0x1d3] sm:$0x1] %v366_v61  ;;  %v368_v63 = vld [vmem:[%s1681_s6 + $0x1fc] sm:$0x1]  ;;  %v401_v0 = vld [vmem:[%s1681_s6 + $0xb] sm:$0x1] }
  0x99   : > { %399 = vst [vmem:[%s1687_s3 + $0x1e3] sm:$0x1] %v367_v62  ;;  %400 = vst [vmem:[%s1687_s3 + $0x1f3] sm:$0x1] %v368_v63  ;;  %v402_v1 = vld [vmem:[%s1681_s6 + $0x1b] sm:$0x1] }
  0x9a   : > { %433 = vst [vmem:[%s1687_s3 + $0x4] sm:$0x1] %v401_v0  ;;  %v403_v2 = vld [vmem:[%s1681_s6 + $0x2b] sm:$0x1]  ;;  %v404_v3 = vld [vmem:[%s1681_s6 + $0x3b] sm:$0x1] }
  0x9b   : > { %434 = vst [vmem:[%s1687_s3 + $0x14] sm:$0x1] %v402_v1  ;;  %435 = vst [vmem:[%s1687_s3 + $0x24] sm:$0x1] %v403_v2  ;;  %v405_v4 = vld [vmem:[%s1681_s6 + $0x4b] sm:$0x1] }
  0x9c   : > { %436 = vst [vmem:[%s1687_s3 + $0x34] sm:$0x1] %v404_v3  ;;  %v406_v5 = vld [vmem:[%s1681_s6 + $0x5b] sm:$0x1]  ;;  %v407_v6 = vld [vmem:[%s1681_s6 + $0x6b] sm:$0x1] }
  0x9d   : > { %437 = vst [vmem:[%s1687_s3 + $0x44] sm:$0x1] %v405_v4  ;;  %438 = vst [vmem:[%s1687_s3 + $0x54] sm:$0x1] %v406_v5  ;;  %v408_v7 = vld [vmem:[%s1681_s6 + $0x7b] sm:$0x1] }
  0x9e   : > { %439 = vst [vmem:[%s1687_s3 + $0x64] sm:$0x1] %v407_v6  ;;  %v409_v8 = vld [vmem:[%s1681_s6 + $0x8b] sm:$0x1]  ;;  %v410_v9 = vld [vmem:[%s1681_s6 + $0x9b] sm:$0x1] }
  0x9f   : > { %440 = vst [vmem:[%s1687_s3 + $0x74] sm:$0x1] %v408_v7  ;;  %441 = vst [vmem:[%s1687_s3 + $0x84] sm:$0x1] %v409_v8  ;;  %v411_v10 = vld [vmem:[%s1681_s6 + $0xab] sm:$0x1] }
  0xa0   : > { %442 = vst [vmem:[%s1687_s3 + $0x94] sm:$0x1] %v410_v9  ;;  %v412_v11 = vld [vmem:[%s1681_s6 + $0xbb] sm:$0x1]  ;;  %v413_v12 = vld [vmem:[%s1681_s6 + $0xcb] sm:$0x1] }
  0xa1   : > { %443 = vst [vmem:[%s1687_s3 + $0xa4] sm:$0x1] %v411_v10  ;;  %444 = vst [vmem:[%s1687_s3 + $0xb4] sm:$0x1] %v412_v11  ;;  %v414_v13 = vld [vmem:[%s1681_s6 + $0xdb] sm:$0x1] }
  0xa2   : > { %445 = vst [vmem:[%s1687_s3 + $0xc4] sm:$0x1] %v413_v12  ;;  %v415_v14 = vld [vmem:[%s1681_s6 + $0xeb] sm:$0x1]  ;;  %v416_v15 = vld [vmem:[%s1681_s6 + $0xfb] sm:$0x1] }
  0xa3   : > { %446 = vst [vmem:[%s1687_s3 + $0xd4] sm:$0x1] %v414_v13  ;;  %447 = vst [vmem:[%s1687_s3 + $0xe4] sm:$0x1] %v415_v14  ;;  %v417_v16 = vld [vmem:[%s1681_s6 + $0x10b] sm:$0x1] }
  0xa4   : > { %448 = vst [vmem:[%s1687_s3 + $0xf4] sm:$0x1] %v416_v15  ;;  %v418_v17 = vld [vmem:[%s1681_s6 + $0x11b] sm:$0x1]  ;;  %v419_v18 = vld [vmem:[%s1681_s6 + $0x12b] sm:$0x1] }
  0xa5   : > { %449 = vst [vmem:[%s1687_s3 + $0x104] sm:$0x1] %v417_v16  ;;  %450 = vst [vmem:[%s1687_s3 + $0x114] sm:$0x1] %v418_v17  ;;  %v420_v19 = vld [vmem:[%s1681_s6 + $0x13b] sm:$0x1] }
  0xa6   : > { %451 = vst [vmem:[%s1687_s3 + $0x124] sm:$0x1] %v419_v18  ;;  %v421_v20 = vld [vmem:[%s1681_s6 + $0x14b] sm:$0x1]  ;;  %v422_v21 = vld [vmem:[%s1681_s6 + $0x15b] sm:$0x1] }
  0xa7   : > { %452 = vst [vmem:[%s1687_s3 + $0x134] sm:$0x1] %v420_v19  ;;  %453 = vst [vmem:[%s1687_s3 + $0x144] sm:$0x1] %v421_v20  ;;  %v423_v22 = vld [vmem:[%s1681_s6 + $0x16b] sm:$0x1] }
  0xa8   : > { %454 = vst [vmem:[%s1687_s3 + $0x154] sm:$0x1] %v422_v21  ;;  %v424_v23 = vld [vmem:[%s1681_s6 + $0x17b] sm:$0x1]  ;;  %v425_v24 = vld [vmem:[%s1681_s6 + $0x18b] sm:$0x1] }
  0xa9   : > { %455 = vst [vmem:[%s1687_s3 + $0x164] sm:$0x1] %v423_v22  ;;  %456 = vst [vmem:[%s1687_s3 + $0x174] sm:$0x1] %v424_v23  ;;  %v426_v25 = vld [vmem:[%s1681_s6 + $0x19b] sm:$0x1] }
  0xaa   : > { %457 = vst [vmem:[%s1687_s3 + $0x184] sm:$0x1] %v425_v24  ;;  %v427_v26 = vld [vmem:[%s1681_s6 + $0x1ab] sm:$0x1]  ;;  %v428_v27 = vld [vmem:[%s1681_s6 + $0x1bb] sm:$0x1] }
  0xab   : > { %458 = vst [vmem:[%s1687_s3 + $0x194] sm:$0x1] %v426_v25  ;;  %459 = vst [vmem:[%s1687_s3 + $0x1a4] sm:$0x1] %v427_v26  ;;  %v429_v28 = vld [vmem:[%s1681_s6 + $0x1cb] sm:$0x1] }
  0xac   : > { %460 = vst [vmem:[%s1687_s3 + $0x1b4] sm:$0x1] %v428_v27  ;;  %v430_v29 = vld [vmem:[%s1681_s6 + $0x1db] sm:$0x1]  ;;  %v431_v30 = vld [vmem:[%s1681_s6 + $0x1eb] sm:$0x1] }
  0xad   : > { %461 = vst [vmem:[%s1687_s3 + $0x1c4] sm:$0x1] %v429_v28  ;;  %462 = vst [vmem:[%s1687_s3 + $0x1d4] sm:$0x1] %v430_v29  ;;  %v432_v31 = vld [vmem:[%s1681_s6 + $0x1fb] sm:$0x1] }
  0xae   : > { %463 = vst [vmem:[%s1687_s3 + $0x1e4] sm:$0x1] %v431_v30  ;;  %v465_v32 = vld [vmem:[%s1681_s6 + $0xa] sm:$0x1]  ;;  %v466_v33 = vld [vmem:[%s1681_s6 + $0x1a] sm:$0x1] }
  0xaf   : > { %464 = vst [vmem:[%s1687_s3 + $0x1f4] sm:$0x1] %v432_v31  ;;  %497 = vst [vmem:[%s1687_s3 + $0x5] sm:$0x1] %v465_v32  ;;  %v467_v34 = vld [vmem:[%s1681_s6 + $0x2a] sm:$0x1] }
  0xb0   : > { %498 = vst [vmem:[%s1687_s3 + $0x15] sm:$0x1] %v466_v33  ;;  %v468_v35 = vld [vmem:[%s1681_s6 + $0x3a] sm:$0x1]  ;;  %v469_v36 = vld [vmem:[%s1681_s6 + $0x4a] sm:$0x1] }
  0xb1   : > { %499 = vst [vmem:[%s1687_s3 + $0x25] sm:$0x1] %v467_v34  ;;  %500 = vst [vmem:[%s1687_s3 + $0x35] sm:$0x1] %v468_v35  ;;  %v470_v37 = vld [vmem:[%s1681_s6 + $0x5a] sm:$0x1] }
  0xb2   : > { %501 = vst [vmem:[%s1687_s3 + $0x45] sm:$0x1] %v469_v36  ;;  %v471_v38 = vld [vmem:[%s1681_s6 + $0x6a] sm:$0x1]  ;;  %v472_v39 = vld [vmem:[%s1681_s6 + $0x7a] sm:$0x1] }
  0xb3   : > { %502 = vst [vmem:[%s1687_s3 + $0x55] sm:$0x1] %v470_v37  ;;  %503 = vst [vmem:[%s1687_s3 + $0x65] sm:$0x1] %v471_v38  ;;  %v473_v40 = vld [vmem:[%s1681_s6 + $0x8a] sm:$0x1] }
  0xb4   : > { %504 = vst [vmem:[%s1687_s3 + $0x75] sm:$0x1] %v472_v39  ;;  %v474_v41 = vld [vmem:[%s1681_s6 + $0x9a] sm:$0x1]  ;;  %v475_v42 = vld [vmem:[%s1681_s6 + $0xaa] sm:$0x1] }
  0xb5   : > { %505 = vst [vmem:[%s1687_s3 + $0x85] sm:$0x1] %v473_v40  ;;  %506 = vst [vmem:[%s1687_s3 + $0x95] sm:$0x1] %v474_v41  ;;  %v476_v43 = vld [vmem:[%s1681_s6 + $0xba] sm:$0x1] }
  0xb6   : > { %507 = vst [vmem:[%s1687_s3 + $0xa5] sm:$0x1] %v475_v42  ;;  %v477_v44 = vld [vmem:[%s1681_s6 + $0xca] sm:$0x1]  ;;  %v478_v45 = vld [vmem:[%s1681_s6 + $0xda] sm:$0x1] }
  0xb7   : > { %508 = vst [vmem:[%s1687_s3 + $0xb5] sm:$0x1] %v476_v43  ;;  %509 = vst [vmem:[%s1687_s3 + $0xc5] sm:$0x1] %v477_v44  ;;  %v479_v46 = vld [vmem:[%s1681_s6 + $0xea] sm:$0x1] }
  0xb8   : > { %510 = vst [vmem:[%s1687_s3 + $0xd5] sm:$0x1] %v478_v45  ;;  %v480_v47 = vld [vmem:[%s1681_s6 + $0xfa] sm:$0x1]  ;;  %v481_v48 = vld [vmem:[%s1681_s6 + $0x10a] sm:$0x1] }
  0xb9   : > { %511 = vst [vmem:[%s1687_s3 + $0xe5] sm:$0x1] %v479_v46  ;;  %512 = vst [vmem:[%s1687_s3 + $0xf5] sm:$0x1] %v480_v47  ;;  %v482_v49 = vld [vmem:[%s1681_s6 + $0x11a] sm:$0x1] }
  0xba   : > { %513 = vst [vmem:[%s1687_s3 + $0x105] sm:$0x1] %v481_v48  ;;  %v483_v50 = vld [vmem:[%s1681_s6 + $0x12a] sm:$0x1]  ;;  %v484_v51 = vld [vmem:[%s1681_s6 + $0x13a] sm:$0x1] }
  0xbb   : > { %514 = vst [vmem:[%s1687_s3 + $0x115] sm:$0x1] %v482_v49  ;;  %515 = vst [vmem:[%s1687_s3 + $0x125] sm:$0x1] %v483_v50  ;;  %v485_v52 = vld [vmem:[%s1681_s6 + $0x14a] sm:$0x1] }
  0xbc   : > { %516 = vst [vmem:[%s1687_s3 + $0x135] sm:$0x1] %v484_v51  ;;  %v486_v53 = vld [vmem:[%s1681_s6 + $0x15a] sm:$0x1]  ;;  %v487_v54 = vld [vmem:[%s1681_s6 + $0x16a] sm:$0x1] }
  0xbd   : > { %517 = vst [vmem:[%s1687_s3 + $0x145] sm:$0x1] %v485_v52  ;;  %518 = vst [vmem:[%s1687_s3 + $0x155] sm:$0x1] %v486_v53  ;;  %v488_v55 = vld [vmem:[%s1681_s6 + $0x17a] sm:$0x1] }
  0xbe   : > { %519 = vst [vmem:[%s1687_s3 + $0x165] sm:$0x1] %v487_v54  ;;  %v489_v56 = vld [vmem:[%s1681_s6 + $0x18a] sm:$0x1]  ;;  %v490_v57 = vld [vmem:[%s1681_s6 + $0x19a] sm:$0x1] }
  0xbf   : > { %520 = vst [vmem:[%s1687_s3 + $0x175] sm:$0x1] %v488_v55  ;;  %521 = vst [vmem:[%s1687_s3 + $0x185] sm:$0x1] %v489_v56  ;;  %v491_v58 = vld [vmem:[%s1681_s6 + $0x1aa] sm:$0x1] }
  0xc0   : > { %522 = vst [vmem:[%s1687_s3 + $0x195] sm:$0x1] %v490_v57  ;;  %v492_v59 = vld [vmem:[%s1681_s6 + $0x1ba] sm:$0x1]  ;;  %v493_v60 = vld [vmem:[%s1681_s6 + $0x1ca] sm:$0x1] }
  0xc1   : > { %523 = vst [vmem:[%s1687_s3 + $0x1a5] sm:$0x1] %v491_v58  ;;  %524 = vst [vmem:[%s1687_s3 + $0x1b5] sm:$0x1] %v492_v59  ;;  %v494_v61 = vld [vmem:[%s1681_s6 + $0x1da] sm:$0x1] }
  0xc2   : > { %525 = vst [vmem:[%s1687_s3 + $0x1c5] sm:$0x1] %v493_v60  ;;  %v495_v62 = vld [vmem:[%s1681_s6 + $0x1ea] sm:$0x1]  ;;  %v496_v63 = vld [vmem:[%s1681_s6 + $0x1fa] sm:$0x1] }
  0xc3   : > { %526 = vst [vmem:[%s1687_s3 + $0x1d5] sm:$0x1] %v494_v61  ;;  %527 = vst [vmem:[%s1687_s3 + $0x1e5] sm:$0x1] %v495_v62  ;;  %v529_v0 = vld [vmem:[%s1681_s6 + $0x9] sm:$0x1] }
  0xc4   : > { %528 = vst [vmem:[%s1687_s3 + $0x1f5] sm:$0x1] %v496_v63  ;;  %v530_v1 = vld [vmem:[%s1681_s6 + $0x19] sm:$0x1]  ;;  %v531_v2 = vld [vmem:[%s1681_s6 + $0x29] sm:$0x1] }
  0xc5   : > { %561 = vst [vmem:[%s1687_s3 + $0x6] sm:$0x1] %v529_v0  ;;  %562 = vst [vmem:[%s1687_s3 + $0x16] sm:$0x1] %v530_v1  ;;  %v532_v3 = vld [vmem:[%s1681_s6 + $0x39] sm:$0x1] }
  0xc6   : > { %563 = vst [vmem:[%s1687_s3 + $0x26] sm:$0x1] %v531_v2  ;;  %v533_v4 = vld [vmem:[%s1681_s6 + $0x49] sm:$0x1]  ;;  %v534_v5 = vld [vmem:[%s1681_s6 + $0x59] sm:$0x1] }
  0xc7   : > { %564 = vst [vmem:[%s1687_s3 + $0x36] sm:$0x1] %v532_v3  ;;  %565 = vst [vmem:[%s1687_s3 + $0x46] sm:$0x1] %v533_v4  ;;  %v535_v6 = vld [vmem:[%s1681_s6 + $0x69] sm:$0x1] }
  0xc8   : > { %566 = vst [vmem:[%s1687_s3 + $0x56] sm:$0x1] %v534_v5  ;;  %v536_v7 = vld [vmem:[%s1681_s6 + $0x79] sm:$0x1]  ;;  %v537_v8 = vld [vmem:[%s1681_s6 + $0x89] sm:$0x1] }
  0xc9   : > { %567 = vst [vmem:[%s1687_s3 + $0x66] sm:$0x1] %v535_v6  ;;  %568 = vst [vmem:[%s1687_s3 + $0x76] sm:$0x1] %v536_v7  ;;  %v538_v9 = vld [vmem:[%s1681_s6 + $0x99] sm:$0x1] }
  0xca   : > { %569 = vst [vmem:[%s1687_s3 + $0x86] sm:$0x1] %v537_v8  ;;  %v539_v10 = vld [vmem:[%s1681_s6 + $0xa9] sm:$0x1]  ;;  %v540_v11 = vld [vmem:[%s1681_s6 + $0xb9] sm:$0x1] }
  0xcb   : > { %570 = vst [vmem:[%s1687_s3 + $0x96] sm:$0x1] %v538_v9  ;;  %571 = vst [vmem:[%s1687_s3 + $0xa6] sm:$0x1] %v539_v10  ;;  %v541_v12 = vld [vmem:[%s1681_s6 + $0xc9] sm:$0x1] }
  0xcc   : > { %572 = vst [vmem:[%s1687_s3 + $0xb6] sm:$0x1] %v540_v11  ;;  %v542_v13 = vld [vmem:[%s1681_s6 + $0xd9] sm:$0x1]  ;;  %v543_v14 = vld [vmem:[%s1681_s6 + $0xe9] sm:$0x1] }
  0xcd   : > { %573 = vst [vmem:[%s1687_s3 + $0xc6] sm:$0x1] %v541_v12  ;;  %574 = vst [vmem:[%s1687_s3 + $0xd6] sm:$0x1] %v542_v13  ;;  %v544_v15 = vld [vmem:[%s1681_s6 + $0xf9] sm:$0x1] }
  0xce   : > { %575 = vst [vmem:[%s1687_s3 + $0xe6] sm:$0x1] %v543_v14  ;;  %v545_v16 = vld [vmem:[%s1681_s6 + $0x109] sm:$0x1]  ;;  %v546_v17 = vld [vmem:[%s1681_s6 + $0x119] sm:$0x1] }
  0xcf   : > { %576 = vst [vmem:[%s1687_s3 + $0xf6] sm:$0x1] %v544_v15  ;;  %577 = vst [vmem:[%s1687_s3 + $0x106] sm:$0x1] %v545_v16  ;;  %v547_v18 = vld [vmem:[%s1681_s6 + $0x129] sm:$0x1] }
  0xd0   : > { %578 = vst [vmem:[%s1687_s3 + $0x116] sm:$0x1] %v546_v17  ;;  %v548_v19 = vld [vmem:[%s1681_s6 + $0x139] sm:$0x1]  ;;  %v549_v20 = vld [vmem:[%s1681_s6 + $0x149] sm:$0x1] }
  0xd1   : > { %579 = vst [vmem:[%s1687_s3 + $0x126] sm:$0x1] %v547_v18  ;;  %580 = vst [vmem:[%s1687_s3 + $0x136] sm:$0x1] %v548_v19  ;;  %v550_v21 = vld [vmem:[%s1681_s6 + $0x159] sm:$0x1] }
  0xd2   : > { %581 = vst [vmem:[%s1687_s3 + $0x146] sm:$0x1] %v549_v20  ;;  %v551_v22 = vld [vmem:[%s1681_s6 + $0x169] sm:$0x1]  ;;  %v552_v23 = vld [vmem:[%s1681_s6 + $0x179] sm:$0x1] }
  0xd3   : > { %582 = vst [vmem:[%s1687_s3 + $0x156] sm:$0x1] %v550_v21  ;;  %583 = vst [vmem:[%s1687_s3 + $0x166] sm:$0x1] %v551_v22  ;;  %v553_v24 = vld [vmem:[%s1681_s6 + $0x189] sm:$0x1] }
  0xd4   : > { %584 = vst [vmem:[%s1687_s3 + $0x176] sm:$0x1] %v552_v23  ;;  %v554_v25 = vld [vmem:[%s1681_s6 + $0x199] sm:$0x1]  ;;  %v555_v26 = vld [vmem:[%s1681_s6 + $0x1a9] sm:$0x1] }
  0xd5   : > { %585 = vst [vmem:[%s1687_s3 + $0x186] sm:$0x1] %v553_v24  ;;  %586 = vst [vmem:[%s1687_s3 + $0x196] sm:$0x1] %v554_v25  ;;  %v556_v27 = vld [vmem:[%s1681_s6 + $0x1b9] sm:$0x1] }
  0xd6   : > { %587 = vst [vmem:[%s1687_s3 + $0x1a6] sm:$0x1] %v555_v26  ;;  %v557_v28 = vld [vmem:[%s1681_s6 + $0x1c9] sm:$0x1]  ;;  %v558_v29 = vld [vmem:[%s1681_s6 + $0x1d9] sm:$0x1] }
  0xd7   : > { %588 = vst [vmem:[%s1687_s3 + $0x1b6] sm:$0x1] %v556_v27  ;;  %589 = vst [vmem:[%s1687_s3 + $0x1c6] sm:$0x1] %v557_v28  ;;  %v559_v30 = vld [vmem:[%s1681_s6 + $0x1e9] sm:$0x1] }
  0xd8   : > { %590 = vst [vmem:[%s1687_s3 + $0x1d6] sm:$0x1] %v558_v29  ;;  %v560_v31 = vld [vmem:[%s1681_s6 + $0x1f9] sm:$0x1]  ;;  %v593_v32 = vld [vmem:[%s1681_s6 + $0x8] sm:$0x1] }
  0xd9   : > { %591 = vst [vmem:[%s1687_s3 + $0x1e6] sm:$0x1] %v559_v30  ;;  %592 = vst [vmem:[%s1687_s3 + $0x1f6] sm:$0x1] %v560_v31  ;;  %v594_v33 = vld [vmem:[%s1681_s6 + $0x18] sm:$0x1] }
  0xda   : > { %625 = vst [vmem:[%s1687_s3 + $0x7] sm:$0x1] %v593_v32  ;;  %v595_v34 = vld [vmem:[%s1681_s6 + $0x28] sm:$0x1]  ;;  %v596_v35 = vld [vmem:[%s1681_s6 + $0x38] sm:$0x1] }
  0xdb   : > { %626 = vst [vmem:[%s1687_s3 + $0x17] sm:$0x1] %v594_v33  ;;  %627 = vst [vmem:[%s1687_s3 + $0x27] sm:$0x1] %v595_v34  ;;  %v597_v36 = vld [vmem:[%s1681_s6 + $0x48] sm:$0x1] }
  0xdc   : > { %628 = vst [vmem:[%s1687_s3 + $0x37] sm:$0x1] %v596_v35  ;;  %v598_v37 = vld [vmem:[%s1681_s6 + $0x58] sm:$0x1]  ;;  %v599_v38 = vld [vmem:[%s1681_s6 + $0x68] sm:$0x1] }
  0xdd   : > { %629 = vst [vmem:[%s1687_s3 + $0x47] sm:$0x1] %v597_v36  ;;  %630 = vst [vmem:[%s1687_s3 + $0x57] sm:$0x1] %v598_v37  ;;  %v600_v39 = vld [vmem:[%s1681_s6 + $0x78] sm:$0x1] }
  0xde   : > { %631 = vst [vmem:[%s1687_s3 + $0x67] sm:$0x1] %v599_v38  ;;  %v601_v40 = vld [vmem:[%s1681_s6 + $0x88] sm:$0x1]  ;;  %v602_v41 = vld [vmem:[%s1681_s6 + $0x98] sm:$0x1] }
  0xdf   : > { %632 = vst [vmem:[%s1687_s3 + $0x77] sm:$0x1] %v600_v39  ;;  %633 = vst [vmem:[%s1687_s3 + $0x87] sm:$0x1] %v601_v40  ;;  %v603_v42 = vld [vmem:[%s1681_s6 + $0xa8] sm:$0x1] }
  0xe0   : > { %634 = vst [vmem:[%s1687_s3 + $0x97] sm:$0x1] %v602_v41  ;;  %v604_v43 = vld [vmem:[%s1681_s6 + $0xb8] sm:$0x1]  ;;  %v605_v44 = vld [vmem:[%s1681_s6 + $0xc8] sm:$0x1] }
  0xe1   : > { %635 = vst [vmem:[%s1687_s3 + $0xa7] sm:$0x1] %v603_v42  ;;  %636 = vst [vmem:[%s1687_s3 + $0xb7] sm:$0x1] %v604_v43  ;;  %v606_v45 = vld [vmem:[%s1681_s6 + $0xd8] sm:$0x1] }
  0xe2   : > { %637 = vst [vmem:[%s1687_s3 + $0xc7] sm:$0x1] %v605_v44  ;;  %v607_v46 = vld [vmem:[%s1681_s6 + $0xe8] sm:$0x1]  ;;  %v608_v47 = vld [vmem:[%s1681_s6 + $0xf8] sm:$0x1] }
  0xe3   : > { %638 = vst [vmem:[%s1687_s3 + $0xd7] sm:$0x1] %v606_v45  ;;  %639 = vst [vmem:[%s1687_s3 + $0xe7] sm:$0x1] %v607_v46  ;;  %v609_v48 = vld [vmem:[%s1681_s6 + $0x108] sm:$0x1] }
  0xe4   : > { %640 = vst [vmem:[%s1687_s3 + $0xf7] sm:$0x1] %v608_v47  ;;  %v610_v49 = vld [vmem:[%s1681_s6 + $0x118] sm:$0x1]  ;;  %v611_v50 = vld [vmem:[%s1681_s6 + $0x128] sm:$0x1] }
  0xe5   : > { %641 = vst [vmem:[%s1687_s3 + $0x107] sm:$0x1] %v609_v48  ;;  %642 = vst [vmem:[%s1687_s3 + $0x117] sm:$0x1] %v610_v49  ;;  %v612_v51 = vld [vmem:[%s1681_s6 + $0x138] sm:$0x1] }
  0xe6   : > { %643 = vst [vmem:[%s1687_s3 + $0x127] sm:$0x1] %v611_v50  ;;  %v613_v52 = vld [vmem:[%s1681_s6 + $0x148] sm:$0x1]  ;;  %v614_v53 = vld [vmem:[%s1681_s6 + $0x158] sm:$0x1] }
  0xe7   : > { %644 = vst [vmem:[%s1687_s3 + $0x137] sm:$0x1] %v612_v51  ;;  %645 = vst [vmem:[%s1687_s3 + $0x147] sm:$0x1] %v613_v52  ;;  %v615_v54 = vld [vmem:[%s1681_s6 + $0x168] sm:$0x1] }
  0xe8   : > { %646 = vst [vmem:[%s1687_s3 + $0x157] sm:$0x1] %v614_v53  ;;  %v616_v55 = vld [vmem:[%s1681_s6 + $0x178] sm:$0x1]  ;;  %v617_v56 = vld [vmem:[%s1681_s6 + $0x188] sm:$0x1] }
  0xe9   : > { %647 = vst [vmem:[%s1687_s3 + $0x167] sm:$0x1] %v615_v54  ;;  %648 = vst [vmem:[%s1687_s3 + $0x177] sm:$0x1] %v616_v55  ;;  %v618_v57 = vld [vmem:[%s1681_s6 + $0x198] sm:$0x1] }
  0xea   : > { %649 = vst [vmem:[%s1687_s3 + $0x187] sm:$0x1] %v617_v56  ;;  %v619_v58 = vld [vmem:[%s1681_s6 + $0x1a8] sm:$0x1]  ;;  %v620_v59 = vld [vmem:[%s1681_s6 + $0x1b8] sm:$0x1] }
  0xeb   : > { %650 = vst [vmem:[%s1687_s3 + $0x197] sm:$0x1] %v618_v57  ;;  %651 = vst [vmem:[%s1687_s3 + $0x1a7] sm:$0x1] %v619_v58  ;;  %v621_v60 = vld [vmem:[%s1681_s6 + $0x1c8] sm:$0x1] }
  0xec   : > { %652 = vst [vmem:[%s1687_s3 + $0x1b7] sm:$0x1] %v620_v59  ;;  %v622_v61 = vld [vmem:[%s1681_s6 + $0x1d8] sm:$0x1]  ;;  %v623_v62 = vld [vmem:[%s1681_s6 + $0x1e8] sm:$0x1] }
  0xed   : > { %653 = vst [vmem:[%s1687_s3 + $0x1c7] sm:$0x1] %v621_v60  ;;  %654 = vst [vmem:[%s1687_s3 + $0x1d7] sm:$0x1] %v622_v61  ;;  %v624_v63 = vld [vmem:[%s1681_s6 + $0x1f8] sm:$0x1] }
  0xee   : > { %655 = vst [vmem:[%s1687_s3 + $0x1e7] sm:$0x1] %v623_v62  ;;  %v657_v0 = vld [vmem:[%s1681_s6 + $0x7] sm:$0x1]  ;;  %v658_v1 = vld [vmem:[%s1681_s6 + $0x17] sm:$0x1] }
  0xef   : > { %656 = vst [vmem:[%s1687_s3 + $0x1f7] sm:$0x1] %v624_v63  ;;  %689 = vst [vmem:[%s1687_s3 + $0x8] sm:$0x1] %v657_v0  ;;  %v659_v2 = vld [vmem:[%s1681_s6 + $0x27] sm:$0x1] }
  0xf0   : > { %690 = vst [vmem:[%s1687_s3 + $0x18] sm:$0x1] %v658_v1  ;;  %v660_v3 = vld [vmem:[%s1681_s6 + $0x37] sm:$0x1]  ;;  %v661_v4 = vld [vmem:[%s1681_s6 + $0x47] sm:$0x1] }
  0xf1   : > { %691 = vst [vmem:[%s1687_s3 + $0x28] sm:$0x1] %v659_v2  ;;  %692 = vst [vmem:[%s1687_s3 + $0x38] sm:$0x1] %v660_v3  ;;  %v662_v5 = vld [vmem:[%s1681_s6 + $0x57] sm:$0x1] }
  0xf2   : > { %693 = vst [vmem:[%s1687_s3 + $0x48] sm:$0x1] %v661_v4  ;;  %v663_v6 = vld [vmem:[%s1681_s6 + $0x67] sm:$0x1]  ;;  %v664_v7 = vld [vmem:[%s1681_s6 + $0x77] sm:$0x1] }
  0xf3   : > { %694 = vst [vmem:[%s1687_s3 + $0x58] sm:$0x1] %v662_v5  ;;  %695 = vst [vmem:[%s1687_s3 + $0x68] sm:$0x1] %v663_v6  ;;  %v665_v8 = vld [vmem:[%s1681_s6 + $0x87] sm:$0x1] }
  0xf4   : > { %696 = vst [vmem:[%s1687_s3 + $0x78] sm:$0x1] %v664_v7  ;;  %v666_v9 = vld [vmem:[%s1681_s6 + $0x97] sm:$0x1]  ;;  %v667_v10 = vld [vmem:[%s1681_s6 + $0xa7] sm:$0x1] }
  0xf5   : > { %697 = vst [vmem:[%s1687_s3 + $0x88] sm:$0x1] %v665_v8  ;;  %698 = vst [vmem:[%s1687_s3 + $0x98] sm:$0x1] %v666_v9  ;;  %v668_v11 = vld [vmem:[%s1681_s6 + $0xb7] sm:$0x1] }
  0xf6   : > { %699 = vst [vmem:[%s1687_s3 + $0xa8] sm:$0x1] %v667_v10  ;;  %v669_v12 = vld [vmem:[%s1681_s6 + $0xc7] sm:$0x1]  ;;  %v670_v13 = vld [vmem:[%s1681_s6 + $0xd7] sm:$0x1] }
  0xf7   : > { %700 = vst [vmem:[%s1687_s3 + $0xb8] sm:$0x1] %v668_v11  ;;  %701 = vst [vmem:[%s1687_s3 + $0xc8] sm:$0x1] %v669_v12  ;;  %v671_v14 = vld [vmem:[%s1681_s6 + $0xe7] sm:$0x1] }
  0xf8   : > { %702 = vst [vmem:[%s1687_s3 + $0xd8] sm:$0x1] %v670_v13  ;;  %v672_v15 = vld [vmem:[%s1681_s6 + $0xf7] sm:$0x1]  ;;  %v673_v16 = vld [vmem:[%s1681_s6 + $0x107] sm:$0x1] }
  0xf9   : > { %703 = vst [vmem:[%s1687_s3 + $0xe8] sm:$0x1] %v671_v14  ;;  %704 = vst [vmem:[%s1687_s3 + $0xf8] sm:$0x1] %v672_v15  ;;  %v674_v17 = vld [vmem:[%s1681_s6 + $0x117] sm:$0x1] }
  0xfa   : > { %705 = vst [vmem:[%s1687_s3 + $0x108] sm:$0x1] %v673_v16  ;;  %v675_v18 = vld [vmem:[%s1681_s6 + $0x127] sm:$0x1]  ;;  %v676_v19 = vld [vmem:[%s1681_s6 + $0x137] sm:$0x1] }
  0xfb   : > { %706 = vst [vmem:[%s1687_s3 + $0x118] sm:$0x1] %v674_v17  ;;  %707 = vst [vmem:[%s1687_s3 + $0x128] sm:$0x1] %v675_v18  ;;  %v677_v20 = vld [vmem:[%s1681_s6 + $0x147] sm:$0x1] }
  0xfc   : > { %708 = vst [vmem:[%s1687_s3 + $0x138] sm:$0x1] %v676_v19  ;;  %v678_v21 = vld [vmem:[%s1681_s6 + $0x157] sm:$0x1]  ;;  %v679_v22 = vld [vmem:[%s1681_s6 + $0x167] sm:$0x1] }
  0xfd   : > { %709 = vst [vmem:[%s1687_s3 + $0x148] sm:$0x1] %v677_v20  ;;  %710 = vst [vmem:[%s1687_s3 + $0x158] sm:$0x1] %v678_v21  ;;  %v680_v23 = vld [vmem:[%s1681_s6 + $0x177] sm:$0x1] }
  0xfe   : > { %711 = vst [vmem:[%s1687_s3 + $0x168] sm:$0x1] %v679_v22  ;;  %v681_v24 = vld [vmem:[%s1681_s6 + $0x187] sm:$0x1]  ;;  %v682_v25 = vld [vmem:[%s1681_s6 + $0x197] sm:$0x1] }
  0xff   : > { %712 = vst [vmem:[%s1687_s3 + $0x178] sm:$0x1] %v680_v23  ;;  %713 = vst [vmem:[%s1687_s3 + $0x188] sm:$0x1] %v681_v24  ;;  %v683_v26 = vld [vmem:[%s1681_s6 + $0x1a7] sm:$0x1] }
 0x100   : > { %714 = vst [vmem:[%s1687_s3 + $0x198] sm:$0x1] %v682_v25  ;;  %v684_v27 = vld [vmem:[%s1681_s6 + $0x1b7] sm:$0x1]  ;;  %v685_v28 = vld [vmem:[%s1681_s6 + $0x1c7] sm:$0x1] }
 0x101   : > { %715 = vst [vmem:[%s1687_s3 + $0x1a8] sm:$0x1] %v683_v26  ;;  %716 = vst [vmem:[%s1687_s3 + $0x1b8] sm:$0x1] %v684_v27  ;;  %v686_v29 = vld [vmem:[%s1681_s6 + $0x1d7] sm:$0x1] }
 0x102   : > { %717 = vst [vmem:[%s1687_s3 + $0x1c8] sm:$0x1] %v685_v28  ;;  %v687_v30 = vld [vmem:[%s1681_s6 + $0x1e7] sm:$0x1]  ;;  %v688_v31 = vld [vmem:[%s1681_s6 + $0x1f7] sm:$0x1] }
 0x103   : > { %718 = vst [vmem:[%s1687_s3 + $0x1d8] sm:$0x1] %v686_v29  ;;  %719 = vst [vmem:[%s1687_s3 + $0x1e8] sm:$0x1] %v687_v30  ;;  %v721_v32 = vld [vmem:[%s1681_s6 + $0x6] sm:$0x1] }
 0x104   : > { %720 = vst [vmem:[%s1687_s3 + $0x1f8] sm:$0x1] %v688_v31  ;;  %v722_v33 = vld [vmem:[%s1681_s6 + $0x16] sm:$0x1]  ;;  %v723_v34 = vld [vmem:[%s1681_s6 + $0x26] sm:$0x1] }
 0x105   : > { %753 = vst [vmem:[%s1687_s3 + $0x9] sm:$0x1] %v721_v32  ;;  %754 = vst [vmem:[%s1687_s3 + $0x19] sm:$0x1] %v722_v33  ;;  %v724_v35 = vld [vmem:[%s1681_s6 + $0x36] sm:$0x1] }
 0x106   : > { %755 = vst [vmem:[%s1687_s3 + $0x29] sm:$0x1] %v723_v34  ;;  %v725_v36 = vld [vmem:[%s1681_s6 + $0x46] sm:$0x1]  ;;  %v726_v37 = vld [vmem:[%s1681_s6 + $0x56] sm:$0x1] }
 0x107   : > { %756 = vst [vmem:[%s1687_s3 + $0x39] sm:$0x1] %v724_v35  ;;  %757 = vst [vmem:[%s1687_s3 + $0x49] sm:$0x1] %v725_v36  ;;  %v727_v38 = vld [vmem:[%s1681_s6 + $0x66] sm:$0x1] }
 0x108   : > { %758 = vst [vmem:[%s1687_s3 + $0x59] sm:$0x1] %v726_v37  ;;  %v728_v39 = vld [vmem:[%s1681_s6 + $0x76] sm:$0x1]  ;;  %v729_v40 = vld [vmem:[%s1681_s6 + $0x86] sm:$0x1] }
 0x109   : > { %759 = vst [vmem:[%s1687_s3 + $0x69] sm:$0x1] %v727_v38  ;;  %760 = vst [vmem:[%s1687_s3 + $0x79] sm:$0x1] %v728_v39  ;;  %v730_v41 = vld [vmem:[%s1681_s6 + $0x96] sm:$0x1] }
 0x10a   : > { %761 = vst [vmem:[%s1687_s3 + $0x89] sm:$0x1] %v729_v40  ;;  %v731_v42 = vld [vmem:[%s1681_s6 + $0xa6] sm:$0x1]  ;;  %v732_v43 = vld [vmem:[%s1681_s6 + $0xb6] sm:$0x1] }
 0x10b   : > { %762 = vst [vmem:[%s1687_s3 + $0x99] sm:$0x1] %v730_v41  ;;  %763 = vst [vmem:[%s1687_s3 + $0xa9] sm:$0x1] %v731_v42  ;;  %v733_v44 = vld [vmem:[%s1681_s6 + $0xc6] sm:$0x1] }
 0x10c   : > { %764 = vst [vmem:[%s1687_s3 + $0xb9] sm:$0x1] %v732_v43  ;;  %v734_v45 = vld [vmem:[%s1681_s6 + $0xd6] sm:$0x1]  ;;  %v735_v46 = vld [vmem:[%s1681_s6 + $0xe6] sm:$0x1] }
 0x10d   : > { %765 = vst [vmem:[%s1687_s3 + $0xc9] sm:$0x1] %v733_v44  ;;  %766 = vst [vmem:[%s1687_s3 + $0xd9] sm:$0x1] %v734_v45  ;;  %v736_v47 = vld [vmem:[%s1681_s6 + $0xf6] sm:$0x1] }
 0x10e   : > { %767 = vst [vmem:[%s1687_s3 + $0xe9] sm:$0x1] %v735_v46  ;;  %v737_v48 = vld [vmem:[%s1681_s6 + $0x106] sm:$0x1]  ;;  %v738_v49 = vld [vmem:[%s1681_s6 + $0x116] sm:$0x1] }
 0x10f   : > { %768 = vst [vmem:[%s1687_s3 + $0xf9] sm:$0x1] %v736_v47  ;;  %769 = vst [vmem:[%s1687_s3 + $0x109] sm:$0x1] %v737_v48  ;;  %v739_v50 = vld [vmem:[%s1681_s6 + $0x126] sm:$0x1] }
 0x110   : > { %770 = vst [vmem:[%s1687_s3 + $0x119] sm:$0x1] %v738_v49  ;;  %v740_v51 = vld [vmem:[%s1681_s6 + $0x136] sm:$0x1]  ;;  %v741_v52 = vld [vmem:[%s1681_s6 + $0x146] sm:$0x1] }
 0x111   : > { %771 = vst [vmem:[%s1687_s3 + $0x129] sm:$0x1] %v739_v50  ;;  %772 = vst [vmem:[%s1687_s3 + $0x139] sm:$0x1] %v740_v51  ;;  %v742_v53 = vld [vmem:[%s1681_s6 + $0x156] sm:$0x1] }
 0x112   : > { %773 = vst [vmem:[%s1687_s3 + $0x149] sm:$0x1] %v741_v52  ;;  %v743_v54 = vld [vmem:[%s1681_s6 + $0x166] sm:$0x1]  ;;  %v744_v55 = vld [vmem:[%s1681_s6 + $0x176] sm:$0x1] }
 0x113   : > { %774 = vst [vmem:[%s1687_s3 + $0x159] sm:$0x1] %v742_v53  ;;  %775 = vst [vmem:[%s1687_s3 + $0x169] sm:$0x1] %v743_v54  ;;  %v745_v56 = vld [vmem:[%s1681_s6 + $0x186] sm:$0x1] }
 0x114   : > { %776 = vst [vmem:[%s1687_s3 + $0x179] sm:$0x1] %v744_v55  ;;  %v746_v57 = vld [vmem:[%s1681_s6 + $0x196] sm:$0x1]  ;;  %v747_v58 = vld [vmem:[%s1681_s6 + $0x1a6] sm:$0x1] }
 0x115   : > { %777 = vst [vmem:[%s1687_s3 + $0x189] sm:$0x1] %v745_v56  ;;  %778 = vst [vmem:[%s1687_s3 + $0x199] sm:$0x1] %v746_v57  ;;  %v748_v59 = vld [vmem:[%s1681_s6 + $0x1b6] sm:$0x1] }
 0x116   : > { %779 = vst [vmem:[%s1687_s3 + $0x1a9] sm:$0x1] %v747_v58  ;;  %v749_v60 = vld [vmem:[%s1681_s6 + $0x1c6] sm:$0x1]  ;;  %v750_v61 = vld [vmem:[%s1681_s6 + $0x1d6] sm:$0x1] }
 0x117   : > { %780 = vst [vmem:[%s1687_s3 + $0x1b9] sm:$0x1] %v748_v59  ;;  %781 = vst [vmem:[%s1687_s3 + $0x1c9] sm:$0x1] %v749_v60  ;;  %v751_v62 = vld [vmem:[%s1681_s6 + $0x1e6] sm:$0x1] }
 0x118   : > { %782 = vst [vmem:[%s1687_s3 + $0x1d9] sm:$0x1] %v750_v61  ;;  %v752_v63 = vld [vmem:[%s1681_s6 + $0x1f6] sm:$0x1]  ;;  %v785_v0 = vld [vmem:[%s1681_s6 + $0x5] sm:$0x1] }
 0x119   : > { %783 = vst [vmem:[%s1687_s3 + $0x1e9] sm:$0x1] %v751_v62  ;;  %784 = vst [vmem:[%s1687_s3 + $0x1f9] sm:$0x1] %v752_v63  ;;  %v786_v1 = vld [vmem:[%s1681_s6 + $0x15] sm:$0x1] }
 0x11a   : > { %817 = vst [vmem:[%s1687_s3 + $0xa] sm:$0x1] %v785_v0  ;;  %v787_v2 = vld [vmem:[%s1681_s6 + $0x25] sm:$0x1]  ;;  %v788_v3 = vld [vmem:[%s1681_s6 + $0x35] sm:$0x1] }
 0x11b   : > { %818 = vst [vmem:[%s1687_s3 + $0x1a] sm:$0x1] %v786_v1  ;;  %819 = vst [vmem:[%s1687_s3 + $0x2a] sm:$0x1] %v787_v2  ;;  %v789_v4 = vld [vmem:[%s1681_s6 + $0x45] sm:$0x1] }
 0x11c   : > { %820 = vst [vmem:[%s1687_s3 + $0x3a] sm:$0x1] %v788_v3  ;;  %v790_v5 = vld [vmem:[%s1681_s6 + $0x55] sm:$0x1]  ;;  %v791_v6 = vld [vmem:[%s1681_s6 + $0x65] sm:$0x1] }
 0x11d   : > { %821 = vst [vmem:[%s1687_s3 + $0x4a] sm:$0x1] %v789_v4  ;;  %822 = vst [vmem:[%s1687_s3 + $0x5a] sm:$0x1] %v790_v5  ;;  %v792_v7 = vld [vmem:[%s1681_s6 + $0x75] sm:$0x1] }
 0x11e   : > { %823 = vst [vmem:[%s1687_s3 + $0x6a] sm:$0x1] %v791_v6  ;;  %v793_v8 = vld [vmem:[%s1681_s6 + $0x85] sm:$0x1]  ;;  %v794_v9 = vld [vmem:[%s1681_s6 + $0x95] sm:$0x1] }
 0x11f   : > { %824 = vst [vmem:[%s1687_s3 + $0x7a] sm:$0x1] %v792_v7  ;;  %825 = vst [vmem:[%s1687_s3 + $0x8a] sm:$0x1] %v793_v8  ;;  %v795_v10 = vld [vmem:[%s1681_s6 + $0xa5] sm:$0x1] }
 0x120   : > { %826 = vst [vmem:[%s1687_s3 + $0x9a] sm:$0x1] %v794_v9  ;;  %v796_v11 = vld [vmem:[%s1681_s6 + $0xb5] sm:$0x1]  ;;  %v797_v12 = vld [vmem:[%s1681_s6 + $0xc5] sm:$0x1] }
 0x121   : > { %827 = vst [vmem:[%s1687_s3 + $0xaa] sm:$0x1] %v795_v10  ;;  %828 = vst [vmem:[%s1687_s3 + $0xba] sm:$0x1] %v796_v11  ;;  %v798_v13 = vld [vmem:[%s1681_s6 + $0xd5] sm:$0x1] }
 0x122   : > { %829 = vst [vmem:[%s1687_s3 + $0xca] sm:$0x1] %v797_v12  ;;  %v799_v14 = vld [vmem:[%s1681_s6 + $0xe5] sm:$0x1]  ;;  %v800_v15 = vld [vmem:[%s1681_s6 + $0xf5] sm:$0x1] }
 0x123   : > { %830 = vst [vmem:[%s1687_s3 + $0xda] sm:$0x1] %v798_v13  ;;  %831 = vst [vmem:[%s1687_s3 + $0xea] sm:$0x1] %v799_v14  ;;  %v801_v16 = vld [vmem:[%s1681_s6 + $0x105] sm:$0x1] }
 0x124   : > { %832 = vst [vmem:[%s1687_s3 + $0xfa] sm:$0x1] %v800_v15  ;;  %v802_v17 = vld [vmem:[%s1681_s6 + $0x115] sm:$0x1]  ;;  %v803_v18 = vld [vmem:[%s1681_s6 + $0x125] sm:$0x1] }
 0x125   : > { %833 = vst [vmem:[%s1687_s3 + $0x10a] sm:$0x1] %v801_v16  ;;  %834 = vst [vmem:[%s1687_s3 + $0x11a] sm:$0x1] %v802_v17  ;;  %v804_v19 = vld [vmem:[%s1681_s6 + $0x135] sm:$0x1] }
 0x126   : > { %835 = vst [vmem:[%s1687_s3 + $0x12a] sm:$0x1] %v803_v18  ;;  %v805_v20 = vld [vmem:[%s1681_s6 + $0x145] sm:$0x1]  ;;  %v806_v21 = vld [vmem:[%s1681_s6 + $0x155] sm:$0x1] }
 0x127   : > { %836 = vst [vmem:[%s1687_s3 + $0x13a] sm:$0x1] %v804_v19  ;;  %837 = vst [vmem:[%s1687_s3 + $0x14a] sm:$0x1] %v805_v20  ;;  %v807_v22 = vld [vmem:[%s1681_s6 + $0x165] sm:$0x1] }
 0x128   : > { %838 = vst [vmem:[%s1687_s3 + $0x15a] sm:$0x1] %v806_v21  ;;  %v808_v23 = vld [vmem:[%s1681_s6 + $0x175] sm:$0x1]  ;;  %v809_v24 = vld [vmem:[%s1681_s6 + $0x185] sm:$0x1] }
 0x129   : > { %839 = vst [vmem:[%s1687_s3 + $0x16a] sm:$0x1] %v807_v22  ;;  %840 = vst [vmem:[%s1687_s3 + $0x17a] sm:$0x1] %v808_v23  ;;  %v810_v25 = vld [vmem:[%s1681_s6 + $0x195] sm:$0x1] }
 0x12a   : > { %841 = vst [vmem:[%s1687_s3 + $0x18a] sm:$0x1] %v809_v24  ;;  %v811_v26 = vld [vmem:[%s1681_s6 + $0x1a5] sm:$0x1]  ;;  %v812_v27 = vld [vmem:[%s1681_s6 + $0x1b5] sm:$0x1] }
 0x12b   : > { %842 = vst [vmem:[%s1687_s3 + $0x19a] sm:$0x1] %v810_v25  ;;  %843 = vst [vmem:[%s1687_s3 + $0x1aa] sm:$0x1] %v811_v26  ;;  %v813_v28 = vld [vmem:[%s1681_s6 + $0x1c5] sm:$0x1] }
 0x12c   : > { %844 = vst [vmem:[%s1687_s3 + $0x1ba] sm:$0x1] %v812_v27  ;;  %v814_v29 = vld [vmem:[%s1681_s6 + $0x1d5] sm:$0x1]  ;;  %v815_v30 = vld [vmem:[%s1681_s6 + $0x1e5] sm:$0x1] }
 0x12d   : > { %845 = vst [vmem:[%s1687_s3 + $0x1ca] sm:$0x1] %v813_v28  ;;  %846 = vst [vmem:[%s1687_s3 + $0x1da] sm:$0x1] %v814_v29  ;;  %v816_v31 = vld [vmem:[%s1681_s6 + $0x1f5] sm:$0x1] }
 0x12e   : > { %847 = vst [vmem:[%s1687_s3 + $0x1ea] sm:$0x1] %v815_v30  ;;  %v849_v32 = vld [vmem:[%s1681_s6 + $0x4] sm:$0x1]  ;;  %v850_v33 = vld [vmem:[%s1681_s6 + $0x14] sm:$0x1] }
 0x12f   : > { %848 = vst [vmem:[%s1687_s3 + $0x1fa] sm:$0x1] %v816_v31  ;;  %881 = vst [vmem:[%s1687_s3 + $0xb] sm:$0x1] %v849_v32  ;;  %v851_v34 = vld [vmem:[%s1681_s6 + $0x24] sm:$0x1] }
 0x130   : > { %882 = vst [vmem:[%s1687_s3 + $0x1b] sm:$0x1] %v850_v33  ;;  %v852_v35 = vld [vmem:[%s1681_s6 + $0x34] sm:$0x1]  ;;  %v853_v36 = vld [vmem:[%s1681_s6 + $0x44] sm:$0x1] }
 0x131   : > { %883 = vst [vmem:[%s1687_s3 + $0x2b] sm:$0x1] %v851_v34  ;;  %884 = vst [vmem:[%s1687_s3 + $0x3b] sm:$0x1] %v852_v35  ;;  %v854_v37 = vld [vmem:[%s1681_s6 + $0x54] sm:$0x1] }
 0x132   : > { %885 = vst [vmem:[%s1687_s3 + $0x4b] sm:$0x1] %v853_v36  ;;  %v855_v38 = vld [vmem:[%s1681_s6 + $0x64] sm:$0x1]  ;;  %v856_v39 = vld [vmem:[%s1681_s6 + $0x74] sm:$0x1] }
 0x133   : > { %886 = vst [vmem:[%s1687_s3 + $0x5b] sm:$0x1] %v854_v37  ;;  %887 = vst [vmem:[%s1687_s3 + $0x6b] sm:$0x1] %v855_v38  ;;  %v857_v40 = vld [vmem:[%s1681_s6 + $0x84] sm:$0x1] }
 0x134   : > { %888 = vst [vmem:[%s1687_s3 + $0x7b] sm:$0x1] %v856_v39  ;;  %v858_v41 = vld [vmem:[%s1681_s6 + $0x94] sm:$0x1]  ;;  %v859_v42 = vld [vmem:[%s1681_s6 + $0xa4] sm:$0x1] }
 0x135   : > { %889 = vst [vmem:[%s1687_s3 + $0x8b] sm:$0x1] %v857_v40  ;;  %890 = vst [vmem:[%s1687_s3 + $0x9b] sm:$0x1] %v858_v41  ;;  %v860_v43 = vld [vmem:[%s1681_s6 + $0xb4] sm:$0x1] }
 0x136   : > { %891 = vst [vmem:[%s1687_s3 + $0xab] sm:$0x1] %v859_v42  ;;  %v861_v44 = vld [vmem:[%s1681_s6 + $0xc4] sm:$0x1]  ;;  %v862_v45 = vld [vmem:[%s1681_s6 + $0xd4] sm:$0x1] }
 0x137   : > { %892 = vst [vmem:[%s1687_s3 + $0xbb] sm:$0x1] %v860_v43  ;;  %893 = vst [vmem:[%s1687_s3 + $0xcb] sm:$0x1] %v861_v44  ;;  %v863_v46 = vld [vmem:[%s1681_s6 + $0xe4] sm:$0x1] }
 0x138   : > { %894 = vst [vmem:[%s1687_s3 + $0xdb] sm:$0x1] %v862_v45  ;;  %v864_v47 = vld [vmem:[%s1681_s6 + $0xf4] sm:$0x1]  ;;  %v865_v48 = vld [vmem:[%s1681_s6 + $0x104] sm:$0x1] }
 0x139   : > { %895 = vst [vmem:[%s1687_s3 + $0xeb] sm:$0x1] %v863_v46  ;;  %896 = vst [vmem:[%s1687_s3 + $0xfb] sm:$0x1] %v864_v47  ;;  %v866_v49 = vld [vmem:[%s1681_s6 + $0x114] sm:$0x1] }
 0x13a   : > { %897 = vst [vmem:[%s1687_s3 + $0x10b] sm:$0x1] %v865_v48  ;;  %v867_v50 = vld [vmem:[%s1681_s6 + $0x124] sm:$0x1]  ;;  %v868_v51 = vld [vmem:[%s1681_s6 + $0x134] sm:$0x1] }
 0x13b   : > { %898 = vst [vmem:[%s1687_s3 + $0x11b] sm:$0x1] %v866_v49  ;;  %899 = vst [vmem:[%s1687_s3 + $0x12b] sm:$0x1] %v867_v50  ;;  %v869_v52 = vld [vmem:[%s1681_s6 + $0x144] sm:$0x1] }
 0x13c   : > { %900 = vst [vmem:[%s1687_s3 + $0x13b] sm:$0x1] %v868_v51  ;;  %v870_v53 = vld [vmem:[%s1681_s6 + $0x154] sm:$0x1]  ;;  %v871_v54 = vld [vmem:[%s1681_s6 + $0x164] sm:$0x1] }
 0x13d   : > { %901 = vst [vmem:[%s1687_s3 + $0x14b] sm:$0x1] %v869_v52  ;;  %902 = vst [vmem:[%s1687_s3 + $0x15b] sm:$0x1] %v870_v53  ;;  %v872_v55 = vld [vmem:[%s1681_s6 + $0x174] sm:$0x1] }
 0x13e   : > { %903 = vst [vmem:[%s1687_s3 + $0x16b] sm:$0x1] %v871_v54  ;;  %v873_v56 = vld [vmem:[%s1681_s6 + $0x184] sm:$0x1]  ;;  %v874_v57 = vld [vmem:[%s1681_s6 + $0x194] sm:$0x1] }
 0x13f   : > { %904 = vst [vmem:[%s1687_s3 + $0x17b] sm:$0x1] %v872_v55  ;;  %905 = vst [vmem:[%s1687_s3 + $0x18b] sm:$0x1] %v873_v56  ;;  %v875_v58 = vld [vmem:[%s1681_s6 + $0x1a4] sm:$0x1] }
 0x140   : > { %906 = vst [vmem:[%s1687_s3 + $0x19b] sm:$0x1] %v874_v57  ;;  %v876_v59 = vld [vmem:[%s1681_s6 + $0x1b4] sm:$0x1]  ;;  %v877_v60 = vld [vmem:[%s1681_s6 + $0x1c4] sm:$0x1] }
 0x141   : > { %907 = vst [vmem:[%s1687_s3 + $0x1ab] sm:$0x1] %v875_v58  ;;  %908 = vst [vmem:[%s1687_s3 + $0x1bb] sm:$0x1] %v876_v59  ;;  %v878_v61 = vld [vmem:[%s1681_s6 + $0x1d4] sm:$0x1] }
 0x142   : > { %909 = vst [vmem:[%s1687_s3 + $0x1cb] sm:$0x1] %v877_v60  ;;  %v879_v62 = vld [vmem:[%s1681_s6 + $0x1e4] sm:$0x1]  ;;  %v880_v63 = vld [vmem:[%s1681_s6 + $0x1f4] sm:$0x1] }
 0x143   : > { %910 = vst [vmem:[%s1687_s3 + $0x1db] sm:$0x1] %v878_v61  ;;  %911 = vst [vmem:[%s1687_s3 + $0x1eb] sm:$0x1] %v879_v62  ;;  %v913_v0 = vld [vmem:[%s1681_s6 + $0x3] sm:$0x1] }
 0x144   : > { %912 = vst [vmem:[%s1687_s3 + $0x1fb] sm:$0x1] %v880_v63  ;;  %v914_v1 = vld [vmem:[%s1681_s6 + $0x13] sm:$0x1]  ;;  %v915_v2 = vld [vmem:[%s1681_s6 + $0x23] sm:$0x1] }
 0x145   : > { %945 = vst [vmem:[%s1687_s3 + $0xc] sm:$0x1] %v913_v0  ;;  %946 = vst [vmem:[%s1687_s3 + $0x1c] sm:$0x1] %v914_v1  ;;  %v916_v3 = vld [vmem:[%s1681_s6 + $0x33] sm:$0x1] }
 0x146   : > { %947 = vst [vmem:[%s1687_s3 + $0x2c] sm:$0x1] %v915_v2  ;;  %v917_v4 = vld [vmem:[%s1681_s6 + $0x43] sm:$0x1]  ;;  %v918_v5 = vld [vmem:[%s1681_s6 + $0x53] sm:$0x1] }
 0x147   : > { %948 = vst [vmem:[%s1687_s3 + $0x3c] sm:$0x1] %v916_v3  ;;  %949 = vst [vmem:[%s1687_s3 + $0x4c] sm:$0x1] %v917_v4  ;;  %v919_v6 = vld [vmem:[%s1681_s6 + $0x63] sm:$0x1] }
 0x148   : > { %950 = vst [vmem:[%s1687_s3 + $0x5c] sm:$0x1] %v918_v5  ;;  %v920_v7 = vld [vmem:[%s1681_s6 + $0x73] sm:$0x1]  ;;  %v921_v8 = vld [vmem:[%s1681_s6 + $0x83] sm:$0x1] }
 0x149   : > { %951 = vst [vmem:[%s1687_s3 + $0x6c] sm:$0x1] %v919_v6  ;;  %952 = vst [vmem:[%s1687_s3 + $0x7c] sm:$0x1] %v920_v7  ;;  %v922_v9 = vld [vmem:[%s1681_s6 + $0x93] sm:$0x1] }
 0x14a   : > { %953 = vst [vmem:[%s1687_s3 + $0x8c] sm:$0x1] %v921_v8  ;;  %v923_v10 = vld [vmem:[%s1681_s6 + $0xa3] sm:$0x1]  ;;  %v924_v11 = vld [vmem:[%s1681_s6 + $0xb3] sm:$0x1] }
 0x14b   : > { %954 = vst [vmem:[%s1687_s3 + $0x9c] sm:$0x1] %v922_v9  ;;  %955 = vst [vmem:[%s1687_s3 + $0xac] sm:$0x1] %v923_v10  ;;  %v925_v12 = vld [vmem:[%s1681_s6 + $0xc3] sm:$0x1] }
 0x14c   : > { %956 = vst [vmem:[%s1687_s3 + $0xbc] sm:$0x1] %v924_v11  ;;  %v926_v13 = vld [vmem:[%s1681_s6 + $0xd3] sm:$0x1]  ;;  %v927_v14 = vld [vmem:[%s1681_s6 + $0xe3] sm:$0x1] }
 0x14d   : > { %957 = vst [vmem:[%s1687_s3 + $0xcc] sm:$0x1] %v925_v12  ;;  %958 = vst [vmem:[%s1687_s3 + $0xdc] sm:$0x1] %v926_v13  ;;  %v928_v15 = vld [vmem:[%s1681_s6 + $0xf3] sm:$0x1] }
 0x14e   : > { %959 = vst [vmem:[%s1687_s3 + $0xec] sm:$0x1] %v927_v14  ;;  %v929_v16 = vld [vmem:[%s1681_s6 + $0x103] sm:$0x1]  ;;  %v930_v17 = vld [vmem:[%s1681_s6 + $0x113] sm:$0x1] }
 0x14f   : > { %960 = vst [vmem:[%s1687_s3 + $0xfc] sm:$0x1] %v928_v15  ;;  %961 = vst [vmem:[%s1687_s3 + $0x10c] sm:$0x1] %v929_v16  ;;  %v931_v18 = vld [vmem:[%s1681_s6 + $0x123] sm:$0x1] }
 0x150   : > { %962 = vst [vmem:[%s1687_s3 + $0x11c] sm:$0x1] %v930_v17  ;;  %v932_v19 = vld [vmem:[%s1681_s6 + $0x133] sm:$0x1]  ;;  %v933_v20 = vld [vmem:[%s1681_s6 + $0x143] sm:$0x1] }
 0x151   : > { %963 = vst [vmem:[%s1687_s3 + $0x12c] sm:$0x1] %v931_v18  ;;  %964 = vst [vmem:[%s1687_s3 + $0x13c] sm:$0x1] %v932_v19  ;;  %v934_v21 = vld [vmem:[%s1681_s6 + $0x153] sm:$0x1] }
 0x152   : > { %965 = vst [vmem:[%s1687_s3 + $0x14c] sm:$0x1] %v933_v20  ;;  %v935_v22 = vld [vmem:[%s1681_s6 + $0x163] sm:$0x1]  ;;  %v936_v23 = vld [vmem:[%s1681_s6 + $0x173] sm:$0x1] }
 0x153   : > { %966 = vst [vmem:[%s1687_s3 + $0x15c] sm:$0x1] %v934_v21  ;;  %967 = vst [vmem:[%s1687_s3 + $0x16c] sm:$0x1] %v935_v22  ;;  %v937_v24 = vld [vmem:[%s1681_s6 + $0x183] sm:$0x1] }
 0x154   : > { %968 = vst [vmem:[%s1687_s3 + $0x17c] sm:$0x1] %v936_v23  ;;  %v938_v25 = vld [vmem:[%s1681_s6 + $0x193] sm:$0x1]  ;;  %v939_v26 = vld [vmem:[%s1681_s6 + $0x1a3] sm:$0x1] }
 0x155   : > { %969 = vst [vmem:[%s1687_s3 + $0x18c] sm:$0x1] %v937_v24  ;;  %970 = vst [vmem:[%s1687_s3 + $0x19c] sm:$0x1] %v938_v25  ;;  %v940_v27 = vld [vmem:[%s1681_s6 + $0x1b3] sm:$0x1] }
 0x156   : > { %971 = vst [vmem:[%s1687_s3 + $0x1ac] sm:$0x1] %v939_v26  ;;  %v941_v28 = vld [vmem:[%s1681_s6 + $0x1c3] sm:$0x1]  ;;  %v942_v29 = vld [vmem:[%s1681_s6 + $0x1d3] sm:$0x1] }
 0x157   : > { %972 = vst [vmem:[%s1687_s3 + $0x1bc] sm:$0x1] %v940_v27  ;;  %973 = vst [vmem:[%s1687_s3 + $0x1cc] sm:$0x1] %v941_v28  ;;  %v943_v30 = vld [vmem:[%s1681_s6 + $0x1e3] sm:$0x1] }
 0x158   : > { %974 = vst [vmem:[%s1687_s3 + $0x1dc] sm:$0x1] %v942_v29  ;;  %v944_v31 = vld [vmem:[%s1681_s6 + $0x1f3] sm:$0x1]  ;;  %v977_v32 = vld [vmem:[%s1681_s6 + $0x2] sm:$0x1] }
 0x159   : > { %975 = vst [vmem:[%s1687_s3 + $0x1ec] sm:$0x1] %v943_v30  ;;  %976 = vst [vmem:[%s1687_s3 + $0x1fc] sm:$0x1] %v944_v31  ;;  %v978_v33 = vld [vmem:[%s1681_s6 + $0x12] sm:$0x1] }
 0x15a   : > { %1009 = vst [vmem:[%s1687_s3 + $0xd] sm:$0x1] %v977_v32  ;;  %v979_v34 = vld [vmem:[%s1681_s6 + $0x22] sm:$0x1]  ;;  %v980_v35 = vld [vmem:[%s1681_s6 + $0x32] sm:$0x1] }
 0x15b   : > { %1010 = vst [vmem:[%s1687_s3 + $0x1d] sm:$0x1] %v978_v33  ;;  %1011 = vst [vmem:[%s1687_s3 + $0x2d] sm:$0x1] %v979_v34  ;;  %v981_v36 = vld [vmem:[%s1681_s6 + $0x42] sm:$0x1] }
 0x15c   : > { %1012 = vst [vmem:[%s1687_s3 + $0x3d] sm:$0x1] %v980_v35  ;;  %v982_v37 = vld [vmem:[%s1681_s6 + $0x52] sm:$0x1]  ;;  %v983_v38 = vld [vmem:[%s1681_s6 + $0x62] sm:$0x1] }
 0x15d   : > { %1013 = vst [vmem:[%s1687_s3 + $0x4d] sm:$0x1] %v981_v36  ;;  %1014 = vst [vmem:[%s1687_s3 + $0x5d] sm:$0x1] %v982_v37  ;;  %v984_v39 = vld [vmem:[%s1681_s6 + $0x72] sm:$0x1] }
 0x15e   : > { %1015 = vst [vmem:[%s1687_s3 + $0x6d] sm:$0x1] %v983_v38  ;;  %v985_v40 = vld [vmem:[%s1681_s6 + $0x82] sm:$0x1]  ;;  %v986_v41 = vld [vmem:[%s1681_s6 + $0x92] sm:$0x1] }
 0x15f   : > { %1016 = vst [vmem:[%s1687_s3 + $0x7d] sm:$0x1] %v984_v39  ;;  %1017 = vst [vmem:[%s1687_s3 + $0x8d] sm:$0x1] %v985_v40  ;;  %v987_v42 = vld [vmem:[%s1681_s6 + $0xa2] sm:$0x1] }
 0x160   : > { %1018 = vst [vmem:[%s1687_s3 + $0x9d] sm:$0x1] %v986_v41  ;;  %v988_v43 = vld [vmem:[%s1681_s6 + $0xb2] sm:$0x1]  ;;  %v989_v44 = vld [vmem:[%s1681_s6 + $0xc2] sm:$0x1] }
 0x161   : > { %1019 = vst [vmem:[%s1687_s3 + $0xad] sm:$0x1] %v987_v42  ;;  %1020 = vst [vmem:[%s1687_s3 + $0xbd] sm:$0x1] %v988_v43  ;;  %v990_v45 = vld [vmem:[%s1681_s6 + $0xd2] sm:$0x1] }
 0x162   : > { %1021 = vst [vmem:[%s1687_s3 + $0xcd] sm:$0x1] %v989_v44  ;;  %v991_v46 = vld [vmem:[%s1681_s6 + $0xe2] sm:$0x1]  ;;  %v992_v47 = vld [vmem:[%s1681_s6 + $0xf2] sm:$0x1] }
 0x163   : > { %1022 = vst [vmem:[%s1687_s3 + $0xdd] sm:$0x1] %v990_v45  ;;  %1023 = vst [vmem:[%s1687_s3 + $0xed] sm:$0x1] %v991_v46  ;;  %v993_v48 = vld [vmem:[%s1681_s6 + $0x102] sm:$0x1] }
 0x164   : > { %1024 = vst [vmem:[%s1687_s3 + $0xfd] sm:$0x1] %v992_v47  ;;  %v994_v49 = vld [vmem:[%s1681_s6 + $0x112] sm:$0x1]  ;;  %v995_v50 = vld [vmem:[%s1681_s6 + $0x122] sm:$0x1] }
 0x165   : > { %1025 = vst [vmem:[%s1687_s3 + $0x10d] sm:$0x1] %v993_v48  ;;  %1026 = vst [vmem:[%s1687_s3 + $0x11d] sm:$0x1] %v994_v49  ;;  %v996_v51 = vld [vmem:[%s1681_s6 + $0x132] sm:$0x1] }
 0x166   : > { %1027 = vst [vmem:[%s1687_s3 + $0x12d] sm:$0x1] %v995_v50  ;;  %v997_v52 = vld [vmem:[%s1681_s6 + $0x142] sm:$0x1]  ;;  %v998_v53 = vld [vmem:[%s1681_s6 + $0x152] sm:$0x1] }
 0x167   : > { %1028 = vst [vmem:[%s1687_s3 + $0x13d] sm:$0x1] %v996_v51  ;;  %1029 = vst [vmem:[%s1687_s3 + $0x14d] sm:$0x1] %v997_v52  ;;  %v999_v54 = vld [vmem:[%s1681_s6 + $0x162] sm:$0x1] }
 0x168   : > { %1030 = vst [vmem:[%s1687_s3 + $0x15d] sm:$0x1] %v998_v53  ;;  %v1000_v55 = vld [vmem:[%s1681_s6 + $0x172] sm:$0x1]  ;;  %v1001_v56 = vld [vmem:[%s1681_s6 + $0x182] sm:$0x1] }
 0x169   : > { %1031 = vst [vmem:[%s1687_s3 + $0x16d] sm:$0x1] %v999_v54  ;;  %1032 = vst [vmem:[%s1687_s3 + $0x17d] sm:$0x1] %v1000_v55  ;;  %v1002_v57 = vld [vmem:[%s1681_s6 + $0x192] sm:$0x1] }
 0x16a   : > { %1033 = vst [vmem:[%s1687_s3 + $0x18d] sm:$0x1] %v1001_v56  ;;  %v1003_v58 = vld [vmem:[%s1681_s6 + $0x1a2] sm:$0x1]  ;;  %v1004_v59 = vld [vmem:[%s1681_s6 + $0x1b2] sm:$0x1] }
 0x16b   : > { %1034 = vst [vmem:[%s1687_s3 + $0x19d] sm:$0x1] %v1002_v57  ;;  %1035 = vst [vmem:[%s1687_s3 + $0x1ad] sm:$0x1] %v1003_v58  ;;  %v1005_v60 = vld [vmem:[%s1681_s6 + $0x1c2] sm:$0x1] }
 0x16c   : > { %1036 = vst [vmem:[%s1687_s3 + $0x1bd] sm:$0x1] %v1004_v59  ;;  %v1006_v61 = vld [vmem:[%s1681_s6 + $0x1d2] sm:$0x1]  ;;  %v1007_v62 = vld [vmem:[%s1681_s6 + $0x1e2] sm:$0x1] }
 0x16d   : > { %1037 = vst [vmem:[%s1687_s3 + $0x1cd] sm:$0x1] %v1005_v60  ;;  %1038 = vst [vmem:[%s1687_s3 + $0x1dd] sm:$0x1] %v1006_v61  ;;  %v1008_v63 = vld [vmem:[%s1681_s6 + $0x1f2] sm:$0x1] }
 0x16e   : > { %1039 = vst [vmem:[%s1687_s3 + $0x1ed] sm:$0x1] %v1007_v62  ;;  %v1041_v0 = vld [vmem:[%s1681_s6 + $0x1] sm:$0x1]  ;;  %v1042_v1 = vld [vmem:[%s1681_s6 + $0x11] sm:$0x1] }
 0x16f   : > { %1040 = vst [vmem:[%s1687_s3 + $0x1fd] sm:$0x1] %v1008_v63  ;;  %1073 = vst [vmem:[%s1687_s3 + $0xe] sm:$0x1] %v1041_v0  ;;  %v1043_v2 = vld [vmem:[%s1681_s6 + $0x21] sm:$0x1] }
 0x170   : > { %1074 = vst [vmem:[%s1687_s3 + $0x1e] sm:$0x1] %v1042_v1  ;;  %v1044_v3 = vld [vmem:[%s1681_s6 + $0x31] sm:$0x1]  ;;  %v1045_v4 = vld [vmem:[%s1681_s6 + $0x41] sm:$0x1] }
 0x171   : > { %1075 = vst [vmem:[%s1687_s3 + $0x2e] sm:$0x1] %v1043_v2  ;;  %1076 = vst [vmem:[%s1687_s3 + $0x3e] sm:$0x1] %v1044_v3  ;;  %v1046_v5 = vld [vmem:[%s1681_s6 + $0x51] sm:$0x1] }
 0x172   : > { %1077 = vst [vmem:[%s1687_s3 + $0x4e] sm:$0x1] %v1045_v4  ;;  %v1047_v6 = vld [vmem:[%s1681_s6 + $0x61] sm:$0x1]  ;;  %v1048_v7 = vld [vmem:[%s1681_s6 + $0x71] sm:$0x1] }
 0x173   : > { %1078 = vst [vmem:[%s1687_s3 + $0x5e] sm:$0x1] %v1046_v5  ;;  %1079 = vst [vmem:[%s1687_s3 + $0x6e] sm:$0x1] %v1047_v6  ;;  %v1049_v8 = vld [vmem:[%s1681_s6 + $0x81] sm:$0x1] }
 0x174   : > { %1080 = vst [vmem:[%s1687_s3 + $0x7e] sm:$0x1] %v1048_v7  ;;  %v1050_v9 = vld [vmem:[%s1681_s6 + $0x91] sm:$0x1]  ;;  %v1051_v10 = vld [vmem:[%s1681_s6 + $0xa1] sm:$0x1] }
 0x175   : > { %1081 = vst [vmem:[%s1687_s3 + $0x8e] sm:$0x1] %v1049_v8  ;;  %1082 = vst [vmem:[%s1687_s3 + $0x9e] sm:$0x1] %v1050_v9  ;;  %v1052_v11 = vld [vmem:[%s1681_s6 + $0xb1] sm:$0x1] }
 0x176   : > { %1083 = vst [vmem:[%s1687_s3 + $0xae] sm:$0x1] %v1051_v10  ;;  %v1053_v12 = vld [vmem:[%s1681_s6 + $0xc1] sm:$0x1]  ;;  %v1054_v13 = vld [vmem:[%s1681_s6 + $0xd1] sm:$0x1] }
 0x177   : > { %1084 = vst [vmem:[%s1687_s3 + $0xbe] sm:$0x1] %v1052_v11  ;;  %1085 = vst [vmem:[%s1687_s3 + $0xce] sm:$0x1] %v1053_v12  ;;  %v1055_v14 = vld [vmem:[%s1681_s6 + $0xe1] sm:$0x1] }
 0x178   : > { %1086 = vst [vmem:[%s1687_s3 + $0xde] sm:$0x1] %v1054_v13  ;;  %v1056_v15 = vld [vmem:[%s1681_s6 + $0xf1] sm:$0x1]  ;;  %v1057_v16 = vld [vmem:[%s1681_s6 + $0x101] sm:$0x1] }
 0x179   : > { %1087 = vst [vmem:[%s1687_s3 + $0xee] sm:$0x1] %v1055_v14  ;;  %1088 = vst [vmem:[%s1687_s3 + $0xfe] sm:$0x1] %v1056_v15  ;;  %v1058_v17 = vld [vmem:[%s1681_s6 + $0x111] sm:$0x1] }
 0x17a   : > { %1089 = vst [vmem:[%s1687_s3 + $0x10e] sm:$0x1] %v1057_v16  ;;  %v1059_v18 = vld [vmem:[%s1681_s6 + $0x121] sm:$0x1]  ;;  %v1060_v19 = vld [vmem:[%s1681_s6 + $0x131] sm:$0x1] }
 0x17b   : > { %1090 = vst [vmem:[%s1687_s3 + $0x11e] sm:$0x1] %v1058_v17  ;;  %1091 = vst [vmem:[%s1687_s3 + $0x12e] sm:$0x1] %v1059_v18  ;;  %v1061_v20 = vld [vmem:[%s1681_s6 + $0x141] sm:$0x1] }
 0x17c   : > { %1092 = vst [vmem:[%s1687_s3 + $0x13e] sm:$0x1] %v1060_v19  ;;  %v1062_v21 = vld [vmem:[%s1681_s6 + $0x151] sm:$0x1]  ;;  %v1063_v22 = vld [vmem:[%s1681_s6 + $0x161] sm:$0x1] }
 0x17d   : > { %1093 = vst [vmem:[%s1687_s3 + $0x14e] sm:$0x1] %v1061_v20  ;;  %1094 = vst [vmem:[%s1687_s3 + $0x15e] sm:$0x1] %v1062_v21  ;;  %v1064_v23 = vld [vmem:[%s1681_s6 + $0x171] sm:$0x1] }
 0x17e   : > { %1095 = vst [vmem:[%s1687_s3 + $0x16e] sm:$0x1] %v1063_v22  ;;  %v1065_v24 = vld [vmem:[%s1681_s6 + $0x181] sm:$0x1]  ;;  %v1066_v25 = vld [vmem:[%s1681_s6 + $0x191] sm:$0x1] }
 0x17f   : > { %1096 = vst [vmem:[%s1687_s3 + $0x17e] sm:$0x1] %v1064_v23  ;;  %1097 = vst [vmem:[%s1687_s3 + $0x18e] sm:$0x1] %v1065_v24  ;;  %v1067_v26 = vld [vmem:[%s1681_s6 + $0x1a1] sm:$0x1] }
 0x180   : > { %1098 = vst [vmem:[%s1687_s3 + $0x19e] sm:$0x1] %v1066_v25  ;;  %v1068_v27 = vld [vmem:[%s1681_s6 + $0x1b1] sm:$0x1]  ;;  %v1069_v28 = vld [vmem:[%s1681_s6 + $0x1c1] sm:$0x1] }
 0x181   : > { %1099 = vst [vmem:[%s1687_s3 + $0x1ae] sm:$0x1] %v1067_v26  ;;  %1100 = vst [vmem:[%s1687_s3 + $0x1be] sm:$0x1] %v1068_v27  ;;  %v1070_v29 = vld [vmem:[%s1681_s6 + $0x1d1] sm:$0x1] }
 0x182   : > { %1101 = vst [vmem:[%s1687_s3 + $0x1ce] sm:$0x1] %v1069_v28  ;;  %v1071_v30 = vld [vmem:[%s1681_s6 + $0x1e1] sm:$0x1]  ;;  %v1072_v31 = vld [vmem:[%s1681_s6 + $0x1f1] sm:$0x1] }
 0x183   : > { %1102 = vst [vmem:[%s1687_s3 + $0x1de] sm:$0x1] %v1070_v29  ;;  %1103 = vst [vmem:[%s1687_s3 + $0x1ee] sm:$0x1] %v1071_v30  ;;  %v1105_v32 = vld [vmem:[%s1681_s6] sm:$0x1] }
 0x184   : > { %1104 = vst [vmem:[%s1687_s3 + $0x1fe] sm:$0x1] %v1072_v31  ;;  %v1106_v33 = vld [vmem:[%s1681_s6 + $0x10] sm:$0x1]  ;;  %v1107_v34 = vld [vmem:[%s1681_s6 + $0x20] sm:$0x1] }
 0x185   : > { %1137 = vst [vmem:[%s1687_s3 + $0xf] sm:$0x1] %v1105_v32  ;;  %1138 = vst [vmem:[%s1687_s3 + $0x1f] sm:$0x1] %v1106_v33  ;;  %v1108_v35 = vld [vmem:[%s1681_s6 + $0x30] sm:$0x1] }
 0x186   : > { %1139 = vst [vmem:[%s1687_s3 + $0x2f] sm:$0x1] %v1107_v34  ;;  %v1109_v36 = vld [vmem:[%s1681_s6 + $0x40] sm:$0x1]  ;;  %v1110_v37 = vld [vmem:[%s1681_s6 + $0x50] sm:$0x1] }
 0x187   : > { %1140 = vst [vmem:[%s1687_s3 + $0x3f] sm:$0x1] %v1108_v35  ;;  %1141 = vst [vmem:[%s1687_s3 + $0x4f] sm:$0x1] %v1109_v36  ;;  %v1111_v38 = vld [vmem:[%s1681_s6 + $0x60] sm:$0x1] }
 0x188   : > { %1142 = vst [vmem:[%s1687_s3 + $0x5f] sm:$0x1] %v1110_v37  ;;  %v1112_v39 = vld [vmem:[%s1681_s6 + $0x70] sm:$0x1]  ;;  %v1113_v40 = vld [vmem:[%s1681_s6 + $0x80] sm:$0x1] }
 0x189   : > { %1143 = vst [vmem:[%s1687_s3 + $0x6f] sm:$0x1] %v1111_v38  ;;  %1144 = vst [vmem:[%s1687_s3 + $0x7f] sm:$0x1] %v1112_v39  ;;  %v1114_v41 = vld [vmem:[%s1681_s6 + $0x90] sm:$0x1] }
 0x18a   : > { %1145 = vst [vmem:[%s1687_s3 + $0x8f] sm:$0x1] %v1113_v40  ;;  %v1115_v42 = vld [vmem:[%s1681_s6 + $0xa0] sm:$0x1]  ;;  %v1116_v43 = vld [vmem:[%s1681_s6 + $0xb0] sm:$0x1] }
 0x18b   : > { %1146 = vst [vmem:[%s1687_s3 + $0x9f] sm:$0x1] %v1114_v41  ;;  %1147 = vst [vmem:[%s1687_s3 + $0xaf] sm:$0x1] %v1115_v42  ;;  %v1117_v44 = vld [vmem:[%s1681_s6 + $0xc0] sm:$0x1] }
 0x18c   : > { %1148 = vst [vmem:[%s1687_s3 + $0xbf] sm:$0x1] %v1116_v43  ;;  %v1118_v45 = vld [vmem:[%s1681_s6 + $0xd0] sm:$0x1]  ;;  %v1119_v46 = vld [vmem:[%s1681_s6 + $0xe0] sm:$0x1] }
 0x18d   : > { %1149 = vst [vmem:[%s1687_s3 + $0xcf] sm:$0x1] %v1117_v44  ;;  %1150 = vst [vmem:[%s1687_s3 + $0xdf] sm:$0x1] %v1118_v45  ;;  %v1120_v47 = vld [vmem:[%s1681_s6 + $0xf0] sm:$0x1] }
 0x18e   : > { %1151 = vst [vmem:[%s1687_s3 + $0xef] sm:$0x1] %v1119_v46  ;;  %v1121_v48 = vld [vmem:[%s1681_s6 + $0x100] sm:$0x1]  ;;  %v1122_v49 = vld [vmem:[%s1681_s6 + $0x110] sm:$0x1] }
 0x18f   : > { %1152 = vst [vmem:[%s1687_s3 + $0xff] sm:$0x1] %v1120_v47  ;;  %1153 = vst [vmem:[%s1687_s3 + $0x10f] sm:$0x1] %v1121_v48  ;;  %v1123_v50 = vld [vmem:[%s1681_s6 + $0x120] sm:$0x1] }
 0x190   : > { %1154 = vst [vmem:[%s1687_s3 + $0x11f] sm:$0x1] %v1122_v49  ;;  %v1124_v51 = vld [vmem:[%s1681_s6 + $0x130] sm:$0x1]  ;;  %v1125_v52 = vld [vmem:[%s1681_s6 + $0x140] sm:$0x1] }
 0x191   : > { %1155 = vst [vmem:[%s1687_s3 + $0x12f] sm:$0x1] %v1123_v50  ;;  %1156 = vst [vmem:[%s1687_s3 + $0x13f] sm:$0x1] %v1124_v51  ;;  %v1126_v53 = vld [vmem:[%s1681_s6 + $0x150] sm:$0x1] }
 0x192   : > { %1157 = vst [vmem:[%s1687_s3 + $0x14f] sm:$0x1] %v1125_v52  ;;  %v1127_v54 = vld [vmem:[%s1681_s6 + $0x160] sm:$0x1]  ;;  %v1128_v55 = vld [vmem:[%s1681_s6 + $0x170] sm:$0x1] }
 0x193   : > { %1158 = vst [vmem:[%s1687_s3 + $0x15f] sm:$0x1] %v1126_v53  ;;  %1159 = vst [vmem:[%s1687_s3 + $0x16f] sm:$0x1] %v1127_v54  ;;  %v1129_v56 = vld [vmem:[%s1681_s6 + $0x180] sm:$0x1] }
 0x194   : > { %1160 = vst [vmem:[%s1687_s3 + $0x17f] sm:$0x1] %v1128_v55  ;;  %v1130_v57 = vld [vmem:[%s1681_s6 + $0x190] sm:$0x1]  ;;  %v1131_v58 = vld [vmem:[%s1681_s6 + $0x1a0] sm:$0x1] }
 0x195   : > { %1161 = vst [vmem:[%s1687_s3 + $0x18f] sm:$0x1] %v1129_v56  ;;  %1162 = vst [vmem:[%s1687_s3 + $0x19f] sm:$0x1] %v1130_v57  ;;  %v1132_v59 = vld [vmem:[%s1681_s6 + $0x1b0] sm:$0x1] }
 0x196   : > { %1163 = vst [vmem:[%s1687_s3 + $0x1af] sm:$0x1] %v1131_v58  ;;  %v1133_v60 = vld [vmem:[%s1681_s6 + $0x1c0] sm:$0x1]  ;;  %v1134_v61 = vld [vmem:[%s1681_s6 + $0x1d0] sm:$0x1] }
 0x197   : > { %1164 = vst [vmem:[%s1687_s3 + $0x1bf] sm:$0x1] %v1132_v59  ;;  %1165 = vst [vmem:[%s1687_s3 + $0x1cf] sm:$0x1] %v1133_v60  ;;  %v1135_v62 = vld [vmem:[%s1681_s6 + $0x1e0] sm:$0x1] }
 0x198   : > { %1166 = vst [vmem:[%s1687_s3 + $0x1df] sm:$0x1] %v1134_v61  ;;  %v1136_v63 = vld [vmem:[%s1681_s6 + $0x1f0] sm:$0x1]  ;;  %1167 = vst [vmem:[%s1687_s3 + $0x1ef] sm:$0x1] %v1135_v62 }
 0x199   : > { %1168 = vst [vmem:[%s1687_s3 + $0x1ff] sm:$0x1] %v1136_v63 }
 0x19a PF: > { %s1169_s21 = sld [smem:[#allocation3]] }
 0x1a0   : > { %p1401_p12 = scmp.ne.s32.totalorder %s1169_s21, 0 }
 0x1a2   : > { %1173 = sbr.rel (%p1401_p12) target bundleno = 456 (0x1c8), region = 36 }
 0x1a7   : > { %v1174_v0 = vld [vmem:[%s1681_s6] sm:$0xff]  ;;  %v1175_v1 = vld [vmem:[%s1681_s6 + $0x8] sm:$0xff]  ;;  %v1176_v2 = vld [vmem:[%s1681_s6 + $0x10] sm:$0xff] }
 0x1a8   : > { %1238 = vst [vmem:[%s1687_s3] sm:$0xff] %v1174_v0  ;;  %1239 = vst [vmem:[%s1687_s3 + $0x8] sm:$0xff] %v1175_v1  ;;  %v1177_v3 = vld [vmem:[%s1681_s6 + $0x18] sm:$0xff]  ;;  %v1178_v4 = vld [vmem:[%s1681_s6 + $0x20] sm:$0xff] }
 0x1a9   : > { %1240 = vst [vmem:[%s1687_s3 + $0x10] sm:$0xff] %v1176_v2  ;;  %v1179_v5 = vld [vmem:[%s1681_s6 + $0x28] sm:$0xff]  ;;  %1241 = vst [vmem:[%s1687_s3 + $0x18] sm:$0xff] %v1177_v3  ;;  %v1180_v6 = vld [vmem:[%s1681_s6 + $0x30] sm:$0xff] }
 0x1aa   : > { %1242 = vst [vmem:[%s1687_s3 + $0x20] sm:$0xff] %v1178_v4  ;;  %1243 = vst [vmem:[%s1687_s3 + $0x28] sm:$0xff] %v1179_v5  ;;  %v1181_v7 = vld [vmem:[%s1681_s6 + $0x38] sm:$0xff]  ;;  %v1182_v8 = vld [vmem:[%s1681_s6 + $0x40] sm:$0xff] }
 0x1ab   : > { %1244 = vst [vmem:[%s1687_s3 + $0x30] sm:$0xff] %v1180_v6  ;;  %1245 = vst [vmem:[%s1687_s3 + $0x38] sm:$0xff] %v1181_v7  ;;  %v1183_v9 = vld [vmem:[%s1681_s6 + $0x48] sm:$0xff]  ;;  %v1184_v10 = vld [vmem:[%s1681_s6 + $0x50] sm:$0xff] }
 0x1ac   : > { %1246 = vst [vmem:[%s1687_s3 + $0x40] sm:$0xff] %v1182_v8  ;;  %v1185_v11 = vld [vmem:[%s1681_s6 + $0x58] sm:$0xff]  ;;  %1247 = vst [vmem:[%s1687_s3 + $0x48] sm:$0xff] %v1183_v9  ;;  %v1186_v12 = vld [vmem:[%s1681_s6 + $0x60] sm:$0xff] }
 0x1ad   : > { %1248 = vst [vmem:[%s1687_s3 + $0x50] sm:$0xff] %v1184_v10  ;;  %1249 = vst [vmem:[%s1687_s3 + $0x58] sm:$0xff] %v1185_v11  ;;  %v1187_v13 = vld [vmem:[%s1681_s6 + $0x68] sm:$0xff]  ;;  %v1188_v14 = vld [vmem:[%s1681_s6 + $0x70] sm:$0xff] }
 0x1ae   : > { %1250 = vst [vmem:[%s1687_s3 + $0x60] sm:$0xff] %v1186_v12  ;;  %1251 = vst [vmem:[%s1687_s3 + $0x68] sm:$0xff] %v1187_v13  ;;  %v1189_v15 = vld [vmem:[%s1681_s6 + $0x78] sm:$0xff]  ;;  %v1190_v16 = vld [vmem:[%s1681_s6 + $0x80] sm:$0xff] }
 0x1af   : > { %1252 = vst [vmem:[%s1687_s3 + $0x70] sm:$0xff] %v1188_v14  ;;  %v1191_v17 = vld [vmem:[%s1681_s6 + $0x88] sm:$0xff]  ;;  %1253 = vst [vmem:[%s1687_s3 + $0x78] sm:$0xff] %v1189_v15  ;;  %v1192_v18 = vld [vmem:[%s1681_s6 + $0x90] sm:$0xff] }
 0x1b0   : > { %1254 = vst [vmem:[%s1687_s3 + $0x80] sm:$0xff] %v1190_v16  ;;  %1255 = vst [vmem:[%s1687_s3 + $0x88] sm:$0xff] %v1191_v17  ;;  %v1193_v19 = vld [vmem:[%s1681_s6 + $0x98] sm:$0xff]  ;;  %v1194_v20 = vld [vmem:[%s1681_s6 + $0xa0] sm:$0xff] }
 0x1b1   : > { %1256 = vst [vmem:[%s1687_s3 + $0x90] sm:$0xff] %v1192_v18  ;;  %1257 = vst [vmem:[%s1687_s3 + $0x98] sm:$0xff] %v1193_v19  ;;  %v1195_v21 = vld [vmem:[%s1681_s6 + $0xa8] sm:$0xff]  ;;  %v1196_v22 = vld [vmem:[%s1681_s6 + $0xb0] sm:$0xff] }
 0x1b2   : > { %1258 = vst [vmem:[%s1687_s3 + $0xa0] sm:$0xff] %v1194_v20  ;;  %v1197_v23 = vld [vmem:[%s1681_s6 + $0xb8] sm:$0xff]  ;;  %1259 = vst [vmem:[%s1687_s3 + $0xa8] sm:$0xff] %v1195_v21  ;;  %v1198_v24 = vld [vmem:[%s1681_s6 + $0xc0] sm:$0xff] }
 0x1b3   : > { %1260 = vst [vmem:[%s1687_s3 + $0xb0] sm:$0xff] %v1196_v22  ;;  %1261 = vst [vmem:[%s1687_s3 + $0xb8] sm:$0xff] %v1197_v23  ;;  %v1199_v25 = vld [vmem:[%s1681_s6 + $0xc8] sm:$0xff]  ;;  %v1200_v26 = vld [vmem:[%s1681_s6 + $0xd0] sm:$0xff] }
 0x1b4   : > { %1262 = vst [vmem:[%s1687_s3 + $0xc0] sm:$0xff] %v1198_v24  ;;  %1263 = vst [vmem:[%s1687_s3 + $0xc8] sm:$0xff] %v1199_v25  ;;  %v1201_v27 = vld [vmem:[%s1681_s6 + $0xd8] sm:$0xff]  ;;  %v1202_v28 = vld [vmem:[%s1681_s6 + $0xe0] sm:$0xff] }
 0x1b5   : > { %1264 = vst [vmem:[%s1687_s3 + $0xd0] sm:$0xff] %v1200_v26  ;;  %v1203_v29 = vld [vmem:[%s1681_s6 + $0xe8] sm:$0xff]  ;;  %1265 = vst [vmem:[%s1687_s3 + $0xd8] sm:$0xff] %v1201_v27  ;;  %v1204_v30 = vld [vmem:[%s1681_s6 + $0xf0] sm:$0xff] }
 0x1b6   : > { %1266 = vst [vmem:[%s1687_s3 + $0xe0] sm:$0xff] %v1202_v28  ;;  %1267 = vst [vmem:[%s1687_s3 + $0xe8] sm:$0xff] %v1203_v29  ;;  %v1205_v31 = vld [vmem:[%s1681_s6 + $0xf8] sm:$0xff]  ;;  %v1206_v32 = vld [vmem:[%s1681_s6 + $0x100] sm:$0xff] }
 0x1b7   : > { %1268 = vst [vmem:[%s1687_s3 + $0xf0] sm:$0xff] %v1204_v30  ;;  %1269 = vst [vmem:[%s1687_s3 + $0xf8] sm:$0xff] %v1205_v31  ;;  %v1207_v33 = vld [vmem:[%s1681_s6 + $0x108] sm:$0xff]  ;;  %v1208_v34 = vld [vmem:[%s1681_s6 + $0x110] sm:$0xff] }
 0x1b8   : > { %1270 = vst [vmem:[%s1687_s3 + $0x100] sm:$0xff] %v1206_v32  ;;  %v1209_v35 = vld [vmem:[%s1681_s6 + $0x118] sm:$0xff]  ;;  %1271 = vst [vmem:[%s1687_s3 + $0x108] sm:$0xff] %v1207_v33  ;;  %v1210_v36 = vld [vmem:[%s1681_s6 + $0x120] sm:$0xff] }
 0x1b9   : > { %1272 = vst [vmem:[%s1687_s3 + $0x110] sm:$0xff] %v1208_v34  ;;  %1273 = vst [vmem:[%s1687_s3 + $0x118] sm:$0xff] %v1209_v35  ;;  %v1211_v37 = vld [vmem:[%s1681_s6 + $0x128] sm:$0xff]  ;;  %v1212_v38 = vld [vmem:[%s1681_s6 + $0x130] sm:$0xff] }
 0x1ba   : > { %1274 = vst [vmem:[%s1687_s3 + $0x120] sm:$0xff] %v1210_v36  ;;  %1275 = vst [vmem:[%s1687_s3 + $0x128] sm:$0xff] %v1211_v37  ;;  %v1213_v39 = vld [vmem:[%s1681_s6 + $0x138] sm:$0xff]  ;;  %v1214_v40 = vld [vmem:[%s1681_s6 + $0x140] sm:$0xff] }
 0x1bb   : > { %1276 = vst [vmem:[%s1687_s3 + $0x130] sm:$0xff] %v1212_v38  ;;  %v1215_v41 = vld [vmem:[%s1681_s6 + $0x148] sm:$0xff]  ;;  %1277 = vst [vmem:[%s1687_s3 + $0x138] sm:$0xff] %v1213_v39  ;;  %v1216_v42 = vld [vmem:[%s1681_s6 + $0x150] sm:$0xff] }
 0x1bc   : > { %1278 = vst [vmem:[%s1687_s3 + $0x140] sm:$0xff] %v1214_v40  ;;  %1279 = vst [vmem:[%s1687_s3 + $0x148] sm:$0xff] %v1215_v41  ;;  %v1217_v43 = vld [vmem:[%s1681_s6 + $0x158] sm:$0xff]  ;;  %v1218_v44 = vld [vmem:[%s1681_s6 + $0x160] sm:$0xff] }
 0x1bd   : > { %1280 = vst [vmem:[%s1687_s3 + $0x150] sm:$0xff] %v1216_v42  ;;  %1281 = vst [vmem:[%s1687_s3 + $0x158] sm:$0xff] %v1217_v43  ;;  %v1219_v45 = vld [vmem:[%s1681_s6 + $0x168] sm:$0xff]  ;;  %v1220_v46 = vld [vmem:[%s1681_s6 + $0x170] sm:$0xff] }
 0x1be   : > { %1282 = vst [vmem:[%s1687_s3 + $0x160] sm:$0xff] %v1218_v44  ;;  %v1221_v47 = vld [vmem:[%s1681_s6 + $0x178] sm:$0xff]  ;;  %1283 = vst [vmem:[%s1687_s3 + $0x168] sm:$0xff] %v1219_v45  ;;  %v1222_v48 = vld [vmem:[%s1681_s6 + $0x180] sm:$0xff] }
 0x1bf   : > { %1284 = vst [vmem:[%s1687_s3 + $0x170] sm:$0xff] %v1220_v46  ;;  %1285 = vst [vmem:[%s1687_s3 + $0x178] sm:$0xff] %v1221_v47  ;;  %v1223_v49 = vld [vmem:[%s1681_s6 + $0x188] sm:$0xff]  ;;  %v1224_v50 = vld [vmem:[%s1681_s6 + $0x190] sm:$0xff] }
 0x1c0   : > { %1286 = vst [vmem:[%s1687_s3 + $0x180] sm:$0xff] %v1222_v48  ;;  %1287 = vst [vmem:[%s1687_s3 + $0x188] sm:$0xff] %v1223_v49  ;;  %v1225_v51 = vld [vmem:[%s1681_s6 + $0x198] sm:$0xff]  ;;  %v1226_v52 = vld [vmem:[%s1681_s6 + $0x1a0] sm:$0xff] }
 0x1c1   : > { %1288 = vst [vmem:[%s1687_s3 + $0x190] sm:$0xff] %v1224_v50  ;;  %v1227_v53 = vld [vmem:[%s1681_s6 + $0x1a8] sm:$0xff]  ;;  %1289 = vst [vmem:[%s1687_s3 + $0x198] sm:$0xff] %v1225_v51  ;;  %v1228_v54 = vld [vmem:[%s1681_s6 + $0x1b0] sm:$0xff] }
 0x1c2   : > { %1290 = vst [vmem:[%s1687_s3 + $0x1a0] sm:$0xff] %v1226_v52  ;;  %1291 = vst [vmem:[%s1687_s3 + $0x1a8] sm:$0xff] %v1227_v53  ;;  %v1229_v55 = vld [vmem:[%s1681_s6 + $0x1b8] sm:$0xff]  ;;  %v1230_v56 = vld [vmem:[%s1681_s6 + $0x1c0] sm:$0xff] }
 0x1c3   : > { %1292 = vst [vmem:[%s1687_s3 + $0x1b0] sm:$0xff] %v1228_v54  ;;  %1293 = vst [vmem:[%s1687_s3 + $0x1b8] sm:$0xff] %v1229_v55  ;;  %v1231_v57 = vld [vmem:[%s1681_s6 + $0x1c8] sm:$0xff]  ;;  %v1232_v58 = vld [vmem:[%s1681_s6 + $0x1d0] sm:$0xff] }
 0x1c4   : > { %1294 = vst [vmem:[%s1687_s3 + $0x1c0] sm:$0xff] %v1230_v56  ;;  %v1233_v59 = vld [vmem:[%s1681_s6 + $0x1d8] sm:$0xff]  ;;  %1295 = vst [vmem:[%s1687_s3 + $0x1c8] sm:$0xff] %v1231_v57  ;;  %v1234_v60 = vld [vmem:[%s1681_s6 + $0x1e0] sm:$0xff] }
 0x1c5   : > { %1296 = vst [vmem:[%s1687_s3 + $0x1d0] sm:$0xff] %v1232_v58  ;;  %1297 = vst [vmem:[%s1687_s3 + $0x1d8] sm:$0xff] %v1233_v59  ;;  %v1235_v61 = vld [vmem:[%s1681_s6 + $0x1e8] sm:$0xff]  ;;  %v1236_v62 = vld [vmem:[%s1681_s6 + $0x1f0] sm:$0xff] }
 0x1c6   : > { %1298 = vst [vmem:[%s1687_s3 + $0x1e0] sm:$0xff] %v1234_v60  ;;  %1299 = vst [vmem:[%s1687_s3 + $0x1e8] sm:$0xff] %v1235_v61  ;;  %v1237_v63 = vld [vmem:[%s1681_s6 + $0x1f8] sm:$0xff] }
 0x1c7   : > { %1300 = vst [vmem:[%s1687_s3 + $0x1f0] sm:$0xff] %v1236_v62  ;;  %1301 = vst [vmem:[%s1687_s3 + $0x1f8] sm:$0xff] %v1237_v63 }
 0x1c8 PF: > { %s1411_s4 = sshll.u32 %s1601_s0, 13  ;;  %s1317_s9 = sshll.u32 %s1687_s3, 4  ;;  %s2848_s9 = int_to_ptr.vmem [resolvable:$true] %s1317_s9 }
 0x1c9   : > { %s2845_s8 = scalar_lea.hbm %s2893_s2, %s1411_s4  ;;  %s1303_s10 = scalar_lea.sflag [#allocation6], %s1677_s27 }
 0x1ca   : > { %s1490_s15 = scalar_lea.vmem %s2848_s9, 8192  ;;  %p2902_p4 = scmp.ne.s32.totalorder %s2898_s22, 0 }
 0x1cb   : > { %p1491_p13 = scmp.ne.s32.totalorder %s2848_s9, %s1490_s15  ;;  %s1559_s17 = smov [#allocation7]  }
 0x1cc   : > { %s1494_s18 = sshll.u32 %s1559_s17, 4  ;;  %s1495_s18 = int_to_ptr.vmem [resolvable:$false] %s1494_s18 }
 0x1cd   : > { %p1492_p5 = pnand %p1491_p13, %p2902_p4  ;;  %s1496_s0 = scalar_lea.vmem %s1495_s18, 16384 }
 0x1ce   : > { %p1497_p8 = scmp.lt.s32.totalorder %s2848_s9, %s1495_s18  ;;  %p1498_p10 = scmp.lt.s32.totalorder %s1496_s0, %s1490_s15 }
 0x1cf   : > { %p1493_p7 = pneg %p1492_p5 }
 0x1d0   : > { %p1499_p0 = por %p1498_p10, %p1497_p8 }
 0x1d2   : > { %p1500_p2 = pnand %p1499_p0, %p1493_p7 }
 0x1d4   : > { %1503 = shalt.err (!%p1500_p2)
}
 0x1d5   : > { %s1504_s20 = scalar_lea.hbm %s2845_s8, 8192  ;;  %s1508_s26 = scalar_lea.hbm %s2893_s2, 16384 }
 0x1d6   : > { %p1505_p9 = scmp.ne.s32.totalorder %s2845_s8, %s1504_s20  ;;  %p1509_p6 = scmp.lt.s32.totalorder %s2845_s8, %s2893_s2 }
 0x1d7   : > { %p1510_p11 = scmp.lt.s32.totalorder %s1508_s26, %s1504_s20 }
 0x1d8   : > { %p1506_p1 = pnand %p1505_p9, %p2902_p4 }
 0x1d9   : > { %p1511_p12 = por %p1510_p11, %p1509_p6 }
 0x1da   : > { %p1507_p3 = pneg %p1506_p1 }
 0x1dc   : > { %p1512_p13 = pnand %p1511_p12, %p1507_p3 }
 0x1de   : > { %1515 = shalt.err (!%p1512_p13)
}
 0x1df   : > { %s1560_s6 = smov 128   ;;  %s1561_s29 = smov 8  }
 0x1e0   : > { %1414 = dma.vmem_to_hbm [thread:$0]  (%p2902_p4), %s2848_s9, 8192, %s2845_s8, %s1303_s10, %s1560_s6, %s1560_s6, %s1561_s29  }
 0x1e1 PF: > { %s1332_s3 = sand.u32 1, %s1542_s11   ;;  %p2903_p5 = scmp.ne.s32.totalorder %s2899_s23, 0 }
 0x1e2   : > { %p2904_p7 = scmp.ge.s32.totalorder %s1554_s14, 2  ;;  %s1333_s21 = scalar_lea.sflag [#allocation6], %s1332_s3 }
 0x1e4   : > { %p1421_p8 = pnand %p2904_p7, %p2903_p5 }
 0x1e6   : > { %p1422_p10 = pneg %p1421_p8 }
 0x1e8   : > { %1537 = dma.done.wait (%p1422_p10), %s1333_s21, 8192  }
 0x1e9   : > { %1539 = vsyncadd (%p1422_p10), %s1333_s21, 4294959104  ;;  %p16_p0 = scmp.ge.s32.totalorder %s1605_s16, 4   ;;  %s2905_s11 = smov %s1546_s12 }
 0x1ea   : > { %s2906_s12 = smov %s1550_s13  ;;  %s2907_s13 = smov %s1617_s19 }
 0x1eb   : > { %s2908_s14 = smov %s1605_s16  ;;  %18 = sbr.rel (!%p16_p0) target bundleno = 7 (0x7), region = 77 }
 0x1f0   :  { %1338 = vsyncpa [#allocation5], 1 }
 0x1f1   :  { %1340 = vsyncpa [#allocation5 + $0x1], 1 }
 0x1f2   :  { %1341 = vsyncpa [#allocation6], 1 }
 0x1f3   :  { %1343 = vsyncpa [#allocation6 + $0x1], 1 }

</bundles_post_ra>
